<compile_context>
chip_gen: v6e
topology: v6e:2x2x1
jax: 0.10.0
libtpu: 0.0.40
codegen_flags: <defaults>
</compile_context>

<pallas_src>
import math

import jax
import jax.numpy as jnp
from jax import lax
from jax.experimental import pallas as pl
from jax.experimental.pallas import tpu as pltpu

# ---- module / problem sizes (small, deterministic) -------------------------
B = 2                  # batch_size
D_MODEL = 32           # d_model
N_HEADS = 4            # n_heads
D_K = D_MODEL // N_HEADS
N = 16                 # n_max_markers
L = B * N              # folded lane axis (batch folded into lanes)
C2 = 2 * D_MODEL
BN_EPS = 1e-5
NEG_INF = -1e9


# ---- fused kernel: everything in one invocation -----------------------------
def _fused_mha_kernel(xs_ref, bias_ref,
                      wqkv_ref, bqkv_ref, wm_ref, bm_ref,
                      w1a_ref, w1b_ref, b1_ref,
                      gamma_ref, beta_ref, w2_ref, b2_ref,
                      out_ref):
    # x_stack: wrapper pre-folded & pre-stacked (3*D_MODEL, B*N); column = b*N + n
    x_stack = xs_ref[...]
    xq = x_stack[0:D_MODEL]                                  # init_query, folded

    # single stacked QKV projection (block-diagonal weight, head-major rows,
    # softmax scale already folded into the Q block)
    qkv = jnp.dot(wqkv_ref[...], x_stack,
                  preferred_element_type=jnp.float32) + bqkv_ref[...]
    q = qkv[0:D_MODEL]                                       # rows: r = h*D_K + d
    k = qkv[D_MODEL:2 * D_MODEL]
    v = qkv[2 * D_MODEL:3 * D_MODEL]

    # per-head scores over the full folded lane axis (cross-batch entries are
    # later killed by the additive bias -> exp underflows to exactly 0)
    s_blocks = []
    for h in range(N_HEADS):
        qh = q[h * D_K:(h + 1) * D_K]                        # (D_K, L)
        kh = k[h * D_K:(h + 1) * D_K]
        s_blocks.append(lax.dot_general(
            qh, kh, (((0,), (0,)), ((), ())),
            preferred_element_type=jnp.float32))             # (L, L)
    # additive mask bias (pre-tiled per head in the wrapper): one vadd
    s = jnp.concatenate(s_blocks, axis=0) + bias_ref[...]    # (H*L, L) = (128, 32)

    # one softmax pass for all heads & batches; exact division for accuracy
    s = s - jnp.max(s, axis=-1, keepdims=True)
    e = jnp.exp(s)
    p = e / jnp.sum(e, axis=-1, keepdims=True)

    # per-head attention outputs, concatenated head-major (contiguous rows)
    o_blocks = []
    for h in range(N_HEADS):
        vh = v[h * D_K:(h + 1) * D_K]                        # (D_K, L)
        ph = p[h * L:(h + 1) * L]                            # (L, L)
        o_blocks.append(lax.dot_general(
            vh, ph, (((1,), (1,)), ((), ())),
            preferred_element_type=jnp.float32))             # (D_K, L)
    attn = jnp.concatenate(o_blocks, axis=0)                 # (D_MODEL, L)

    # merge conv (columns pre-permuted host-side to consume head-major rows)
    merged = jnp.dot(wm_ref[...], attn,
                     preferred_element_type=jnp.float32) + bm_ref[...]

    # post_merge[0]: W1 split host-side -> concat([merged, init_query]) never built
    h1 = (jnp.dot(w1a_ref[...], merged, preferred_element_type=jnp.float32)
          + jnp.dot(w1b_ref[...], xq, preferred_element_type=jnp.float32)
          + b1_ref[...])                                     # (C2, L)

    # BatchNorm1d (training-mode batch stats over (B, N) == the lane axis) + ReLU
    mean = jnp.mean(h1, axis=1, keepdims=True)
    ex2 = jnp.mean(h1 * h1, axis=1, keepdims=True)
    var = ex2 - mean * mean
    hn = (h1 - mean) * lax.rsqrt(var + BN_EPS) * gamma_ref[...] + beta_ref[...]
    hn = jnp.maximum(hn, 0.0)

    # final 1x1 conv -> single lane-dense store of the whole (D_MODEL, B*N) slab
    out_ref[...] = (jnp.dot(w2_ref[...], hn, preferred_element_type=jnp.float32)
                    + b2_ref[...])


# ---- host-side (one-time) weight preparation --------------------------------
def prepare_kernel_params(params):
    (wq, bq, wk, bk, wv, bv, wm, bm, w1, b1, gamma, beta, w2, b2) = params
    # head-major permutation: new row r = h*D_K + d  <-  original channel c = d*N_HEADS + h
    # (mirrors PyTorch .view(B, d_k, n_heads, -1) channel order)
    perm = jnp.array([d * N_HEADS + h for h in range(N_HEADS) for d in range(D_K)],
                     dtype=jnp.int32)
    scale = 1.0 / math.sqrt(D_K)
    wq_hm, bq_hm = wq[perm, :] * scale, bq[perm] * scale     # softmax scale folded into Q
    wk_hm, bk_hm = wk[perm, :], bk[perm]
    wv_hm, bv_hm = wv[perm, :], bv[perm]
    # block-diagonal QKV weight: [Wq 0 0; 0 Wk 0; 0 0 Wv] (Q/K/V have distinct inputs)
    z = jnp.zeros((D_MODEL, D_MODEL), jnp.float32)
    w_qkv = jnp.block([[wq_hm, z, z], [z, wk_hm, z], [z, z, wv_hm]])   # (3D, 3D)
    b_qkv = jnp.concatenate([bq_hm, bk_hm, bv_hm]).reshape(3 * D_MODEL, 1)
    wm_hm = wm[:, perm]                       # merge consumes head-major rows directly
    w1a, w1b = w1[:, :D_MODEL], w1[:, D_MODEL:]
    return (w_qkv, b_qkv, wm_hm, bm.reshape(D_MODEL, 1),
            w1a, w1b, b1.reshape(C2, 1),
            gamma.reshape(C2, 1), beta.reshape(C2, 1),
            w2, b2.reshape(D_MODEL, 1))


# ---- wrapper: layout plumbing outside, one gridless fully-VMEM pallas_call ---
def _fold(x):  # (B, C, N) -> (C, B*N), column index = b*N + n
    return jnp.transpose(x, (1, 0, 2)).reshape(x.shape[1], L)


def multi_head_attention(kparams, init_query, key, value, mask):
    # stacked, batch-folded input for the block-diagonal QKV matmul
    x_stack = jnp.concatenate([_fold(init_query), _fold(key), _fold(value)], axis=0)

    # additive mask bias in the kernel's score layout, block-diagonal over batch.
    # NOTE: a fully-masked query row would attend (near-)uniformly here instead of
    # uniformly within its batch; matches the reference for all non-degenerate masks.
    maskf = mask.reshape(B, N, N).astype(jnp.float32)
    blk = jnp.where(maskf == 0.0, jnp.float32(NEG_INF), jnp.float32(0.0))  # (B, N, N)
    same_batch = jnp.eye(B, dtype=bool)[:, None, :, None]                  # (B,1,B,1)
    bias4 = jnp.where(same_batch, blk[:, :, None, :], jnp.float32(NEG_INF))
    bias = jnp.tile(bias4.reshape(L, L), (N_HEADS, 1))                     # (H*L, L)

    vmem = pl.BlockSpec(memory_space=pltpu.MemorySpace.VMEM)
    n_in = 2 + len(kparams)
    y = pl.pallas_call(
        _fused_mha_kernel,
        out_shape=jax.ShapeDtypeStruct((D_MODEL, L), jnp.float32),
        in_specs=[vmem] * n_in,
        out_specs=vmem,
    )(x_stack, bias, *kparams)
    # unfold lanes -> batch outside the kernel
    return jnp.transpose(y.reshape(D_MODEL, B, N), (1, 0, 2))


# ---- deterministic parameter init (shapes from the module's __init__) -------
def init_params(key):
    ks = jax.random.split(key, 11)

    def w(k, o, i):
        return jax.random.normal(k, (o, i), jnp.float32) * (1.0 / math.sqrt(i))

    def bias(k, o):
        return jax.random.normal(k, (o,), jnp.float32) * 0.01

    wq = w(ks[0], D_MODEL, D_MODEL); bq = bias(ks[1], D_MODEL)
    wk = w(ks[2], D_MODEL, D_MODEL); bk = bias(ks[3], D_MODEL)
    wv = w(ks[4], D_MODEL, D_MODEL); bv = bias(ks[5], D_MODEL)
    wm = w(ks[6], D_MODEL, D_MODEL); bm = bias(ks[7], D_MODEL)
    w1 = w(ks[8], C2, C2);           b1 = bias(ks[9], C2)
    gamma = jnp.ones((C2,), jnp.float32)        # BatchNorm1d default weight
    beta = jnp.zeros((C2,), jnp.float32)        # BatchNorm1d default bias
    w2 = w(ks[10], D_MODEL, C2)
    b2 = jnp.zeros((D_MODEL,), jnp.float32)     # nn.init.constant_(post_merge[-1].bias, 0.0)
    return (wq, bq, wk, bk, wv, bv, wm, bm, w1, b1, gamma, beta, w2, b2)


# ---- pure-JAX reference (mirrors the PyTorch forward, training-mode BN) -----
def reference(params, init_query, key, value, mask):
    (wq, bq, wk, bk, wv, bv, wm, bm, w1, b1, gamma, beta, w2, b2) = params

    def conv(W, bb, x):
        return jnp.einsum('oc,bcn->bon', W, x) + bb[None, :, None]

    q = conv(wq, bq, init_query).reshape(B, D_K, N_HEADS, N)
    k = conv(wk, bk, key).reshape(B, D_K, N_HEADS, N)
    v = conv(wv, bv, value).reshape(B, D_K, N_HEADS, N)
    scores = jnp.einsum('bdhn,bdhm->bhnm', q, k) / math.sqrt(D_K)
    scores = jnp.where(mask == 0, -1e9, scores)
    attn = jax.nn.softmax(scores, axis=-1)
    x = jnp.einsum('bhnm,bdhm->bdhn', attn, v).reshape(B, D_MODEL, N)
    x = conv(wm, bm, x)
    cat = jnp.concatenate([x, init_query], axis=1)
    h1 = conv(w1, b1, cat)
    mean = h1.mean(axis=(0, 2), keepdims=True)
    var = ((h1 - mean) ** 2).mean(axis=(0, 2), keepdims=True)
    hb = (h1 - mean) / jnp.sqrt(var + BN_EPS) * gamma[None, :, None] + beta[None, :, None]
    hb = jax.nn.relu(hb)
    return conv(w2, b2, hb)


if __name__ == "__main__":
    root = jax.random.PRNGKey(0)
    kp, kq, kk, kv, km = jax.random.split(root, 5)
    params = init_params(kp)
    kparams = prepare_kernel_params(params)   # one-time host-side weight prep

    init_query = jax.random.normal(kq, (B, D_MODEL, N), jnp.float32)
    key_in = jax.random.normal(kk, (B, D_MODEL, N), jnp.float32)
    value = jax.random.normal(kv, (B, D_MODEL, N), jnp.float32)
    mask = (jax.random.uniform(km, (B, 1, N, N)) > 0.2).astype(jnp.float32)

    out = multi_head_attention(kparams, init_query, key_in, value, mask)
    out = jax.block_until_ready(out)

    ref = reference(params, init_query, key_in, value, mask)
    assert out.shape == (B, D_MODEL, N)
    assert jnp.allclose(out, ref, atol=1e-3, rtol=1e-3), float(jnp.max(jnp.abs(out - ref)))
    print("KERNEL_OK")
</pallas_src>

<mosaic_0001>
module attributes {stable_mosaic.version = 11 : i64} {
  func.func @_fused_mha_kernel(%arg0: memref<96x32xf32, #tpu.memory_space<vmem>>, %arg1: memref<128x32xf32, #tpu.memory_space<vmem>>, %arg2: memref<96x96xf32, #tpu.memory_space<vmem>>, %arg3: memref<96x1xf32, #tpu.memory_space<vmem>>, %arg4: memref<32x32xf32, #tpu.memory_space<vmem>>, %arg5: memref<32x1xf32, #tpu.memory_space<vmem>>, %arg6: memref<64x32xf32, #tpu.memory_space<vmem>>, %arg7: memref<64x32xf32, #tpu.memory_space<vmem>>, %arg8: memref<64x1xf32, #tpu.memory_space<vmem>>, %arg9: memref<64x1xf32, #tpu.memory_space<vmem>>, %arg10: memref<64x1xf32, #tpu.memory_space<vmem>>, %arg11: memref<32x64xf32, #tpu.memory_space<vmem>>, %arg12: memref<32x1xf32, #tpu.memory_space<vmem>>, %arg13: memref<32x32xf32, #tpu.memory_space<vmem>>) attributes {dimension_semantics = [], scalar_prefetch = 0 : i64, scratch_operands = 0 : i64, tpu.core_type = #tpu.core_type<tc>} {
    %c0 = arith.constant 0 : index
    %c0_0 = arith.constant 0 : index
    %0 = vector.load %arg0[%c0, %c0_0] : memref<96x32xf32, #tpu.memory_space<vmem>>, vector<96x32xf32>
    %1 = vector.extract_strided_slice %0 {offsets = [0, 0], sizes = [32, 32], strides = [1, 1]} : vector<96x32xf32> to vector<32x32xf32>
    %c0_1 = arith.constant 0 : index
    %c0_2 = arith.constant 0 : index
    %2 = vector.load %arg2[%c0_1, %c0_2] : memref<96x96xf32, #tpu.memory_space<vmem>>, vector<96x96xf32>
    %cst = arith.constant dense<0.000000e+00> : vector<96x32xf32>
    %3 = tpu.matmul %2, %0, %cst {dimension_numbers = #tpu.dot_dimension_numbers<[1], [0], [0], [1], [0, 0, 1, 1], [], []>} : vector<96x96xf32>, vector<96x32xf32>, vector<96x32xf32> -> vector<96x32xf32>
    %c0_3 = arith.constant 0 : index
    %c0_4 = arith.constant 0 : index
    %4 = vector.load %arg3[%c0_3, %c0_4] : memref<96x1xf32, #tpu.memory_space<vmem>>, vector<96x1xf32>
    %5 = vector.broadcast %4 : vector<96x1xf32> to vector<96x32xf32>
    %6 = arith.addf %3, %5 : vector<96x32xf32>
    %7 = vector.extract_strided_slice %6 {offsets = [0, 0], sizes = [32, 32], strides = [1, 1]} : vector<96x32xf32> to vector<32x32xf32>
    %8 = vector.extract_strided_slice %6 {offsets = [32, 0], sizes = [32, 32], strides = [1, 1]} : vector<96x32xf32> to vector<32x32xf32>
    %9 = vector.extract_strided_slice %6 {offsets = [64, 0], sizes = [32, 32], strides = [1, 1]} : vector<96x32xf32> to vector<32x32xf32>
    %10 = vector.extract_strided_slice %7 {offsets = [0, 0], sizes = [8, 32], strides = [1, 1]} : vector<32x32xf32> to vector<8x32xf32>
    %11 = vector.extract_strided_slice %8 {offsets = [0, 0], sizes = [8, 32], strides = [1, 1]} : vector<32x32xf32> to vector<8x32xf32>
    %cst_5 = arith.constant dense<0.000000e+00> : vector<32x32xf32>
    %12 = tpu.matmul %10, %11, %cst_5 {dimension_numbers = #tpu.dot_dimension_numbers<[0], [0], [1], [1], [0, 1, 1, 1], [], []>} : vector<8x32xf32>, vector<8x32xf32>, vector<32x32xf32> -> vector<32x32xf32>
    %13 = vector.extract_strided_slice %7 {offsets = [8, 0], sizes = [8, 32], strides = [1, 1]} : vector<32x32xf32> to vector<8x32xf32>
    %14 = vector.extract_strided_slice %8 {offsets = [8, 0], sizes = [8, 32], strides = [1, 1]} : vector<32x32xf32> to vector<8x32xf32>
    %cst_6 = arith.constant dense<0.000000e+00> : vector<32x32xf32>
    %15 = tpu.matmul %13, %14, %cst_6 {dimension_numbers = #tpu.dot_dimension_numbers<[0], [0], [1], [1], [0, 1, 1, 1], [], []>} : vector<8x32xf32>, vector<8x32xf32>, vector<32x32xf32> -> vector<32x32xf32>
    %16 = vector.extract_strided_slice %7 {offsets = [16, 0], sizes = [8, 32], strides = [1, 1]} : vector<32x32xf32> to vector<8x32xf32>
    %17 = vector.extract_strided_slice %8 {offsets = [16, 0], sizes = [8, 32], strides = [1, 1]} : vector<32x32xf32> to vector<8x32xf32>
    %cst_7 = arith.constant dense<0.000000e+00> : vector<32x32xf32>
    %18 = tpu.matmul %16, %17, %cst_7 {dimension_numbers = #tpu.dot_dimension_numbers<[0], [0], [1], [1], [0, 1, 1, 1], [], []>} : vector<8x32xf32>, vector<8x32xf32>, vector<32x32xf32> -> vector<32x32xf32>
    %19 = vector.extract_strided_slice %7 {offsets = [24, 0], sizes = [8, 32], strides = [1, 1]} : vector<32x32xf32> to vector<8x32xf32>
    %20 = vector.extract_strided_slice %8 {offsets = [24, 0], sizes = [8, 32], strides = [1, 1]} : vector<32x32xf32> to vector<8x32xf32>
    %cst_8 = arith.constant dense<0.000000e+00> : vector<32x32xf32>
    %21 = tpu.matmul %19, %20, %cst_8 {dimension_numbers = #tpu.dot_dimension_numbers<[0], [0], [1], [1], [0, 1, 1, 1], [], []>} : vector<8x32xf32>, vector<8x32xf32>, vector<32x32xf32> -> vector<32x32xf32>
    %22 = tpu.concatenate %12, %15, %18, %21 in 0 : vector<32x32xf32>, vector<32x32xf32>, vector<32x32xf32>, vector<32x32xf32> -> vector<128x32xf32>
    %c0_9 = arith.constant 0 : index
    %c0_10 = arith.constant 0 : index
    %23 = vector.load %arg1[%c0_9, %c0_10] : memref<128x32xf32, #tpu.memory_space<vmem>>, vector<128x32xf32>
    %24 = arith.addf %22, %23 : vector<128x32xf32>
    %cst_11 = arith.constant dense<0xFF800000> : vector<128xf32>
    %25 = vector.multi_reduction <maximumf>, %24, %cst_11 [1] : vector<128x32xf32> to vector<128xf32>
    %26 = vector.shape_cast %25 : vector<128xf32> to vector<128x1xf32>
    %27 = vector.broadcast %26 : vector<128x1xf32> to vector<128x32xf32>
    %28 = arith.subf %24, %27 : vector<128x32xf32>
    %29 = math.exp %28 : vector<128x32xf32>
    %cst_12 = arith.constant dense<0.000000e+00> : vector<128xf32>
    %30 = vector.multi_reduction <add>, %29, %cst_12 [1] : vector<128x32xf32> to vector<128xf32>
    %31 = vector.shape_cast %30 : vector<128xf32> to vector<128x1xf32>
    %32 = vector.broadcast %31 : vector<128x1xf32> to vector<128x32xf32>
    %33 = arith.divf %29, %32 : vector<128x32xf32>
    %34 = vector.extract_strided_slice %9 {offsets = [0, 0], sizes = [8, 32], strides = [1, 1]} : vector<32x32xf32> to vector<8x32xf32>
    %35 = vector.extract_strided_slice %33 {offsets = [0, 0], sizes = [32, 32], strides = [1, 1]} : vector<128x32xf32> to vector<32x32xf32>
    %cst_13 = arith.constant dense<0.000000e+00> : vector<8x32xf32>
    %36 = tpu.matmul %34, %35, %cst_13 {dimension_numbers = #tpu.dot_dimension_numbers<[1], [1], [0], [0], [0, 0, 1, 0], [], []>} : vector<8x32xf32>, vector<32x32xf32>, vector<8x32xf32> -> vector<8x32xf32>
    %37 = vector.extract_strided_slice %9 {offsets = [8, 0], sizes = [8, 32], strides = [1, 1]} : vector<32x32xf32> to vector<8x32xf32>
    %38 = vector.extract_strided_slice %33 {offsets = [32, 0], sizes = [32, 32], strides = [1, 1]} : vector<128x32xf32> to vector<32x32xf32>
    %cst_14 = arith.constant dense<0.000000e+00> : vector<8x32xf32>
    %39 = tpu.matmul %37, %38, %cst_14 {dimension_numbers = #tpu.dot_dimension_numbers<[1], [1], [0], [0], [0, 0, 1, 0], [], []>} : vector<8x32xf32>, vector<32x32xf32>, vector<8x32xf32> -> vector<8x32xf32>
    %40 = vector.extract_strided_slice %9 {offsets = [16, 0], sizes = [8, 32], strides = [1, 1]} : vector<32x32xf32> to vector<8x32xf32>
    %41 = vector.extract_strided_slice %33 {offsets = [64, 0], sizes = [32, 32], strides = [1, 1]} : vector<128x32xf32> to vector<32x32xf32>
    %cst_15 = arith.constant dense<0.000000e+00> : vector<8x32xf32>
    %42 = tpu.matmul %40, %41, %cst_15 {dimension_numbers = #tpu.dot_dimension_numbers<[1], [1], [0], [0], [0, 0, 1, 0], [], []>} : vector<8x32xf32>, vector<32x32xf32>, vector<8x32xf32> -> vector<8x32xf32>
    %43 = vector.extract_strided_slice %9 {offsets = [24, 0], sizes = [8, 32], strides = [1, 1]} : vector<32x32xf32> to vector<8x32xf32>
    %44 = vector.extract_strided_slice %33 {offsets = [96, 0], sizes = [32, 32], strides = [1, 1]} : vector<128x32xf32> to vector<32x32xf32>
    %cst_16 = arith.constant dense<0.000000e+00> : vector<8x32xf32>
    %45 = tpu.matmul %43, %44, %cst_16 {dimension_numbers = #tpu.dot_dimension_numbers<[1], [1], [0], [0], [0, 0, 1, 0], [], []>} : vector<8x32xf32>, vector<32x32xf32>, vector<8x32xf32> -> vector<8x32xf32>
    %46 = tpu.concatenate %36, %39, %42, %45 in 0 : vector<8x32xf32>, vector<8x32xf32>, vector<8x32xf32>, vector<8x32xf32> -> vector<32x32xf32>
    %c0_17 = arith.constant 0 : index
    %c0_18 = arith.constant 0 : index
    %47 = vector.load %arg4[%c0_17, %c0_18] : memref<32x32xf32, #tpu.memory_space<vmem>>, vector<32x32xf32>
    %cst_19 = arith.constant dense<0.000000e+00> : vector<32x32xf32>
    %48 = tpu.matmul %47, %46, %cst_19 {dimension_numbers = #tpu.dot_dimension_numbers<[1], [0], [0], [1], [0, 0, 1, 1], [], []>} : vector<32x32xf32>, vector<32x32xf32>, vector<32x32xf32> -> vector<32x32xf32>
    %c0_20 = arith.constant 0 : index
    %c0_21 = arith.constant 0 : index
    %49 = vector.load %arg5[%c0_20, %c0_21] : memref<32x1xf32, #tpu.memory_space<vmem>>, vector<32x1xf32>
    %50 = vector.broadcast %49 : vector<32x1xf32> to vector<32x32xf32>
    %51 = arith.addf %48, %50 : vector<32x32xf32>
    %c0_22 = arith.constant 0 : index
    %c0_23 = arith.constant 0 : index
    %52 = vector.load %arg6[%c0_22, %c0_23] : memref<64x32xf32, #tpu.memory_space<vmem>>, vector<64x32xf32>
    %cst_24 = arith.constant dense<0.000000e+00> : vector<64x32xf32>
    %53 = tpu.matmul %52, %51, %cst_24 {dimension_numbers = #tpu.dot_dimension_numbers<[1], [0], [0], [1], [0, 0, 1, 1], [], []>} : vector<64x32xf32>, vector<32x32xf32>, vector<64x32xf32> -> vector<64x32xf32>
    %c0_25 = arith.constant 0 : index
    %c0_26 = arith.constant 0 : index
    %54 = vector.load %arg7[%c0_25, %c0_26] : memref<64x32xf32, #tpu.memory_space<vmem>>, vector<64x32xf32>
    %cst_27 = arith.constant dense<0.000000e+00> : vector<64x32xf32>
    %55 = tpu.matmul %54, %1, %cst_27 {dimension_numbers = #tpu.dot_dimension_numbers<[1], [0], [0], [1], [0, 0, 1, 1], [], []>} : vector<64x32xf32>, vector<32x32xf32>, vector<64x32xf32> -> vector<64x32xf32>
    %56 = arith.addf %53, %55 : vector<64x32xf32>
    %c0_28 = arith.constant 0 : index
    %c0_29 = arith.constant 0 : index
    %57 = vector.load %arg8[%c0_28, %c0_29] : memref<64x1xf32, #tpu.memory_space<vmem>>, vector<64x1xf32>
    %58 = vector.broadcast %57 : vector<64x1xf32> to vector<64x32xf32>
    %59 = arith.addf %56, %58 : vector<64x32xf32>
    %cst_30 = arith.constant dense<0.000000e+00> : vector<64xf32>
    %60 = vector.multi_reduction <add>, %59, %cst_30 [1] : vector<64x32xf32> to vector<64xf32>
    %61 = vector.shape_cast %60 : vector<64xf32> to vector<64x1xf32>
    %cst_31 = arith.constant 3.200000e+01 : f32
    %62 = vector.broadcast %cst_31 : f32 to vector<64x1xf32>
    %63 = arith.divf %61, %62 : vector<64x1xf32>
    %64 = arith.mulf %59, %59 : vector<64x32xf32>
    %cst_32 = arith.constant dense<0.000000e+00> : vector<64xf32>
    %65 = vector.multi_reduction <add>, %64, %cst_32 [1] : vector<64x32xf32> to vector<64xf32>
    %66 = vector.shape_cast %65 : vector<64xf32> to vector<64x1xf32>
    %cst_33 = arith.constant 3.200000e+01 : f32
    %67 = vector.broadcast %cst_33 : f32 to vector<64x1xf32>
    %68 = arith.divf %66, %67 : vector<64x1xf32>
    %69 = arith.mulf %63, %63 : vector<64x1xf32>
    %70 = arith.subf %68, %69 : vector<64x1xf32>
    %71 = vector.broadcast %63 : vector<64x1xf32> to vector<64x32xf32>
    %72 = arith.subf %59, %71 : vector<64x32xf32>
    %cst_34 = arith.constant 9.99999974E-6 : f32
    %73 = vector.broadcast %cst_34 : f32 to vector<64x1xf32>
    %74 = arith.addf %70, %73 : vector<64x1xf32>
    %75 = math.rsqrt %74 : vector<64x1xf32>
    %76 = vector.broadcast %75 : vector<64x1xf32> to vector<64x32xf32>
    %77 = arith.mulf %72, %76 : vector<64x32xf32>
    %c0_35 = arith.constant 0 : index
    %c0_36 = arith.constant 0 : index
    %78 = vector.load %arg9[%c0_35, %c0_36] : memref<64x1xf32, #tpu.memory_space<vmem>>, vector<64x1xf32>
    %79 = vector.broadcast %78 : vector<64x1xf32> to vector<64x32xf32>
    %80 = arith.mulf %77, %79 : vector<64x32xf32>
    %c0_37 = arith.constant 0 : index
    %c0_38 = arith.constant 0 : index
    %81 = vector.load %arg10[%c0_37, %c0_38] : memref<64x1xf32, #tpu.memory_space<vmem>>, vector<64x1xf32>
    %82 = vector.broadcast %81 : vector<64x1xf32> to vector<64x32xf32>
    %83 = arith.addf %80, %82 : vector<64x32xf32>
    %cst_39 = arith.constant 0.000000e+00 : f32
    %84 = vector.broadcast %cst_39 : f32 to vector<64x32xf32>
    %85 = arith.maximumf %83, %84 : vector<64x32xf32>
    %c0_40 = arith.constant 0 : index
    %c0_41 = arith.constant 0 : index
    %86 = vector.load %arg11[%c0_40, %c0_41] : memref<32x64xf32, #tpu.memory_space<vmem>>, vector<32x64xf32>
    %cst_42 = arith.constant dense<0.000000e+00> : vector<32x32xf32>
    %87 = tpu.matmul %86, %85, %cst_42 {dimension_numbers = #tpu.dot_dimension_numbers<[1], [0], [0], [1], [0, 0, 1, 1], [], []>} : vector<32x64xf32>, vector<64x32xf32>, vector<32x32xf32> -> vector<32x32xf32>
    %c0_43 = arith.constant 0 : index
    %c0_44 = arith.constant 0 : index
    %88 = vector.load %arg12[%c0_43, %c0_44] : memref<32x1xf32, #tpu.memory_space<vmem>>, vector<32x1xf32>
    %89 = vector.broadcast %88 : vector<32x1xf32> to vector<32x32xf32>
    %90 = arith.addf %87, %89 : vector<32x32xf32>
    %c0_45 = arith.constant 0 : index
    %c0_46 = arith.constant 0 : index
    %91 = vector.load %arg13[%c0_45, %c0_46] : memref<32x32xf32, #tpu.memory_space<vmem>>, vector<32x32xf32>
    tpu.vector_store %arg13[%c0_45, %c0_46], %90 {strides = array<i32>} : memref<32x32xf32, #tpu.memory_space<vmem>>, vector<32x32xf32>,
    return
  }
}

</mosaic_0001>

<bundles_post_ra>
// kernel: tpu_custom_call.1
= control target key start
LH: loop header
LB: loop body
LE: loop exit
PB: predicated region body
PF: predicated region fallthrough
CT: control target
= control target key end

     0   :  { %v2711_v2 = vmov 0   ;;  %vm141_vm0 = vcmask 785408   ;;  %s3482_s0 = inlined_call_operand.vmem [shape: f32[96,32], index: 0, kind: input, shape index: {}]   ;;  %s3483_s1 = inlined_call_operand.vmem [shape: f32[128,32], index: 1, kind: input, shape index: {}]   ;;  %s3484_s2 = inlined_call_operand.vmem [shape: f32[96,96], index: 2, kind: input, shape index: {}]   ;;  %s3485_s3 = inlined_call_operand.vmem [shape: f32[96,1], index: 3, kind: input, shape index: {}]   ;;  %s3486_s4 = inlined_call_operand.vmem [shape: f32[32,32], index: 4, kind: input, shape index: {}]   ;;  %s3487_s5 = inlined_call_operand.vmem [shape: f32[32,1], index: 5, kind: input, shape index: {}]   ;;  %s3488_s6 = inlined_call_operand.vmem [shape: f32[64,32], index: 6, kind: input, shape index: {}]   ;;  %s3489_s7 = inlined_call_operand.vmem [shape: f32[64,32], index: 7, kind: input, shape index: {}]   ;;  %s3490_s8 = inlined_call_operand.vmem [shape: f32[64,1], index: 8, kind: input, shape index: {}]   ;;  %s3491_s9 = inlined_call_operand.vmem [shape: f32[64,1], index: 9, kind: input, shape index: {}]   ;;  %s3492_s10 = inlined_call_operand.vmem [shape: f32[64,1], index: 10, kind: input, shape index: {}]   ;;  %s3493_s11 = inlined_call_operand.vmem [shape: f32[32,64], index: 11, kind: input, shape index: {}]   ;;  %s3494_s12 = inlined_call_operand.vmem [shape: f32[32,1], index: 12, kind: input, shape index: {}]   ;;  %s3495_s13 = inlined_call_operand.hbm [shape: f32[32,32], index: 13, kind: output, shape index: {}]  }
   0x1   :  { %v56_v0 = vld [vmem:[%s3482_s0 + $0x58] sm:$0xff]  ;;  %v55_v1 = vld [vmem:[%s3482_s0 + $0x50] sm:$0xff]  ;;  %2607 = vset.pattern.permute.xlu0 %v2711_v2  ;;  %v54_v3 = vld [vmem:[%s3482_s0 + $0x48] sm:$0xff]  ;;  %2608 = vset.pattern.permute.xlu1 %v2711_v2 }
   0x2   :  { %2391 = vmatprep.subr.mxu0 %v56_v0  ;;  %v53_v4 = vld [vmem:[%s3482_s0 + $0x40] sm:$0xff]  ;;  %v52_v6 = vld [vmem:[%s3482_s0 + $0x38] sm:$0xff]  ;;  %v51_v8 = vld [vmem:[%s3482_s0 + $0x30] sm:$0xff] }
   0x3   :  { %2392 = vmatpush3.msra.mxu0 %v56_v0  ;;  %v57_v5 = vld [vmem:[%s3484_s2] sm:$0xff]  ;;  %v70_v9 = vld [vmem:[%s3485_s3 + $0x8] sm:$0xff]  ;;  %v71_v10 = vld [vmem:[%s3485_s3 + $0x10] sm:$0xff] }
   0x4   :  { %2393 = vmatprep.subr.mxu0 %v55_v1  ;;  %2415 = vmatprep.mubr.msk.f32.mxu0 %vm141_vm0, %v57_v5  ;;  %v69_v7 = vld [vmem:[%s3485_s3] sm:$0xff] }
   0x5   :  { %2394 = vmatpush3.msra.mxu0 %v55_v1  ;;  %83 = vperm.xlu0 %2607, %v69_v7  }
   0x6   :  { %2395 = vmatprep.subr.mxu0 %v54_v3  ;;  %93 = vperm.xlu1 %2608, %v71_v10  }
   0x7   :  { %2396 = vmatpush3.msra.mxu0 %v54_v3 }
   0x8   :  { %2397 = vmatprep.subr.mxu0 %v53_v4 }
   0x9   :  { %2398 = vmatpush3.msra.mxu0 %v53_v4 }
   0xa   :  { %2399 = vmatprep.subr.mxu0 %v52_v6 }
   0xb   :  { %18 = vsyncpa [#allocation3], 0  ;;  %2400 = vmatpush3.msra.mxu0 %v52_v6  ;;  %v50_v11 = vld [vmem:[%s3482_s0 + $0x28] sm:$0xff]  ;;  %v72_v12 = vld [vmem:[%s3485_s3 + $0x18] sm:$0xff]  ;;  %88 = vperm.xlu0 %2607, %v70_v9   ;;  %vm335_vm1 = vcmask 64512   ;;  %vm852_vm2 = vcmask 261120  }
   0xc   :  { %2401 = vmatprep.subr.mxu0 %v51_v8  ;;  %v49_v13 = vld [vmem:[%s3482_s0 + $0x20] sm:$0xff]  ;;  %98 = vperm.xlu1 %2608, %v72_v12   ;;  %v2833_v15 = vld [vmem:[%s3482_s0 + $0x18] sm:$0xff]  ;;  %v74_v16 = vld [vmem:[%s3485_s3 + $0x28] sm:$0xff]  ;;  %vm2713_vm3 = vmmov 0   ;;  %vm2093_vm4 = vcmask 523264   ;;  %s2714_s30 = smov [#allocation2]  }
   0xd   :  { %2402 = vmatpush3.msra.mxu0 %v51_v8  ;;  %v73_v14 = vld [vmem:[%s3485_s3 + $0x20] sm:$0xff]  ;;  %v2841_v17 = vld [vmem:[%s3482_s0 + $0x10] sm:$0xff]  ;;  %v2851_v19 = vld [vmem:[%s3482_s0 + $0x8] sm:$0xff]  ;;  %s2200_s14 = sshll.u32 %s2714_s30, 4  ;;  %s2201_s14 = int_to_ptr.vmem [resolvable:$true] %s2200_s14 }
   0xe   :  { %2403 = vmatprep.subr.mxu0 %v50_v11  ;;  %v75_v18 = vld [vmem:[%s3485_s3 + $0x30] sm:$0xff]  ;;  %v76_v20 = vld [vmem:[%s3485_s3 + $0x38] sm:$0xff]  ;;  %v2861_v21 = vld [vmem:[%s3482_s0] sm:$0xff]  ;;  %p2694_p1 = scmp.lt.s32.totalorder %s2201_s14, %s2201_s14 }
   0xf   :  { %2404 = vmatpush3.msra.mxu0 %v50_v11  ;;  %103 = vperm.xlu0 %2607, %v73_v14   ;;  %v58_v22 = vld [vmem:[%s3484_s2 + $0x8] sm:$0xff]  ;;  %v59_v23 = vld [vmem:[%s3484_s2 + $0x10] sm:$0xff]  ;;  %v60_v24 = vld [vmem:[%s3484_s2 + $0x18] sm:$0xff] }
  0x10   :  { %2405 = vmatprep.subr.mxu0 %v49_v13  ;;  %108 = vperm.xlu1 %2608, %v74_v16   ;;  %v61_v25 = vld [vmem:[%s3484_s2 + $0x20] sm:$0xff]  ;;  %v62_v26 = vld [vmem:[%s3484_s2 + $0x28] sm:$0xff]  ;;  %v63_v27 = vld [vmem:[%s3484_s2 + $0x30] sm:$0xff] }
  0x11   :  { %2406 = vmatpush3.msra.mxu0 %v49_v13  ;;  %v64_v28 = vld [vmem:[%s3484_s2 + $0x38] sm:$0xff]  ;;  %v65_v47 = vld [vmem:[%s3484_s2 + $0x40] sm:$0xff]  ;;  %v66_v48 = vld [vmem:[%s3484_s2 + $0x48] sm:$0xff] }
  0x12   :  { %2407 = vmatprep.subr.mxu0 %v2833_v15  ;;  %v67_v7 = vld [vmem:[%s3484_s2 + $0x50] sm:$0xff]  ;;  %v68_v8 = vld [vmem:[%s3484_s2 + $0x58] sm:$0xff]  ;;  %v825_v16 = vld [vmem:[%s3483_s1 + $0x28] sm:$0xff] }
  0x13   :  { %2408 = vmatpush3.msra.mxu0 %v2833_v15  ;;  %113 = vperm.xlu0 %2607, %v75_v18   ;;  %v823_v11 = vld [vmem:[%s3483_s1 + $0x18] sm:$0xff] }
  0x14   :  { %2409 = vmatprep.subr.mxu0 %v2841_v17  ;;  %118 = vperm.xlu1 %2608, %v76_v20  }
  0x15   :  { %2410 = vmatpush3.msra.mxu0 %v2841_v17 }
  0x16   :  { %2411 = vmatprep.subr.mxu0 %v2851_v19 }
  0x17   :  { %2412 = vmatpush3.msra.mxu0 %v2851_v19 }
  0x18   :  { %2413 = vmatprep.subr.mxu0 %v2861_v21 }
  0x19   :  { %2414 = vmatpush3.msra.mxu0 %v2861_v21 }
  0x1a   :  { %2416 = vmatmul.mubr.msk.f32.vlgmr.msra.gmra.mxu0 %vm141_vm0, %v58_v22  ;;  %v824_v22 = vld [vmem:[%s3483_s1 + $0x20] sm:$0xff] }
  0x1b   :  { %2418 = vmatprep.mubr.msk.f32.mxu0 %vm141_vm0, %v59_v23 }
  0x1e   :  { %2419 = vmatmul.mubr.msk.f32.gmra.mxu0 %vm141_vm0, %v60_v24 }
  0x1f   :  { %2421 = vmatprep.mubr.msk.f32.mxu0 %vm141_vm0, %v61_v25  ;;  %v827_v25 = vld [vmem:[%s3483_s1 + $0x38] sm:$0xff] }
  0x22   :  { %2422 = vmatmul.mubr.msk.f32.gmra.mxu0 %vm141_vm0, %v62_v26 }
  0x23   :  { %2424 = vmatprep.mubr.msk.f32.mxu0 %vm141_vm0, %v63_v27 }
  0x26   :  { %2425 = vmatmul.mubr.msk.f32.gmra.mxu0 %vm141_vm0, %v64_v28 }
  0x27   :  { %2427 = vmatprep.mubr.msk.f32.mxu0 %vm141_vm0, %v65_v47 }
  0x2a   :  { %2428 = vmatmul.mubr.msk.f32.gmra.mxu0 %vm141_vm0, %v66_v48  ;;  %v832_v48 = vld [vmem:[%s3483_s1 + $0x60] sm:$0xff] }
  0x2b   :  { %2430 = vmatprep.mubr.msk.f32.mxu0 %vm141_vm0, %v67_v7 }
  0x2e   :  { %2431 = vmatmul.mubr.msk.f32.gmra.mxu0 %vm141_vm0, %v68_v8 }
  0x80   :  { %v84_v29 = vpop.permute.xlu0 %83 }
  0x81   :  { %v94_v34 = vpop.permute.xlu1 %93 }
  0x86   :  { %v89_v30 = vpop.permute.xlu0 %88 }
  0x87   :  { %v99_v38 = vpop.permute.xlu1 %98 }
  0x8a   :  { %v104_v40 = vpop.permute.xlu0 %103 }
  0x8b   :  { %v109_v42 = vpop.permute.xlu1 %108 }
  0x8e   :  { %v114_v50 = vpop.permute.xlu0 %113 }
  0x8f   :  { %v119_v49 = vpop.permute.xlu1 %118 }
  0xda   :  { %v2417_v31 = vpop.f32.mrf.mxu0 }
  0xdb   :  { %v250_v32 = vadd.f32 %v2417_v31, %v89_v30 }
  0xdc   :  { %v244_v33 = vpop.f32.mrf.mxu0 }
  0xdd   :  { %v245_v35 = vadd.f32 %v244_v33, %v84_v29  ;;  %433 = vxpose.xlu1.b32.start.end [1/1] (short) (narrow) %v250_v32, 32  ;;  %v826_v29 = vld [vmem:[%s3483_s1 + $0x30] sm:$0xff] }
  0xde   :  { %v2420_v36 = vpop.f32.mrf.mxu0 }
  0xdf   :  { %303 = vxpose.xlu0.b32.start.end [1/1] (short) (narrow) %v245_v35, 32  ;;  %v260_v45 = vadd.f32 %v2420_v36, %v99_v38  ;;  %v822_v35 = vld [vmem:[%s3483_s1 + $0x10] sm:$0xff] }
  0xe0   :  { %v254_v37 = vpop.f32.mrf.mxu0 }
  0xe1   :  { %v255_v46 = vadd.f32 %v254_v37, %v94_v34 }
  0xe2   :  { %v2423_v39 = vpop.f32.mrf.mxu0 }
  0xe3   :  { %v270_v44 = vadd.f32 %v2423_v39, %v109_v42 }
  0xe4   :  { %v264_v41 = vpop.f32.mrf.mxu0 }
  0xe5   :  { %v265_v43 = vadd.f32 %v264_v41, %v104_v40  ;;  %v821_v40 = vld [vmem:[%s3483_s1 + $0x8] sm:$0xff] }
  0xe6   :  { %v2426_v51 = vpop.f32.mrf.mxu0 }
  0xe7   :  { %2433 = vmatprep.subr.mxu1 %v265_v43  ;;  %v280_v0 = vadd.f32 %v2426_v51, %v119_v49 }
  0xe8   :  { %2434 = vmatpush3.msra.mxu1 %v265_v43  ;;  %v274_v54 = vpop.f32.mrf.mxu0  ;;  %v833_v43 = vld [vmem:[%s3483_s1 + $0x68] sm:$0xff] }
  0xe9   :  { %2441 = vmatprep.subr.mxu1 %v270_v44  ;;  %v275_v57 = vadd.f32 %v274_v54, %v114_v50  ;;  %v831_v50 = vld [vmem:[%s3483_s1 + $0x58] sm:$0xff] }
  0xea   :  { %691 = vxpose.xlu1.b32.start.end [1/1] (short) (narrow) %v260_v45, 32 }
  0xec   :  { %562 = vxpose.xlu0.b32.start.end [1/1] (short) (narrow) %v255_v46, 32  ;;  %v820_v46 = vld [vmem:[%s3483_s1] sm:$0xff] }
 0x159   :  { %v449_v52 = vpop.trf.xlu1 }
 0x15b   :  { %v319_v53 = vpop.trf.xlu0 }
 0x15c   :  { %2435 = vmatprep.mubr.msk.f32.mxu1 %vm335_vm1, %v319_v53 }
 0x15d   :  { %v450_v55 = vpop.trf.xlu1 }
 0x15f   :  { %v320_v56 = vpop.trf.xlu0 }
 0x160   :  { %2436 = vmatmul.mubr.msk.f32.vlgmr.msra.gmra.mxu1 %vm335_vm1, %v320_v56 }
 0x161   :  { %2442 = vmatpush3.msra.mxu1 %v270_v44  ;;  %v451_v58 = vpop.trf.xlu1 }
 0x162   :  { %2449 = vmatprep.subr.mxu1 %v275_v57 }
 0x163   :  { %v321_v59 = vpop.trf.xlu0 }
 0x164   :  { %2438 = vmatprep.mubr.msk.f32.mxu1 %vm335_vm1, %v321_v59 }
 0x165   :  { %v452_v61 = vpop.trf.xlu1 }
 0x167   :  { %v322_v60 = vpop.trf.xlu0 }
 0x168   :  { %2439 = vmatmul.mubr.msk.f32.gmra.mxu1 %vm335_vm1, %v322_v60 }
 0x169   :  { %2443 = vmatprep.mubr.msk.f32.mxu1 %vm335_vm1, %v449_v52  ;;  %v707_v63 = vpop.trf.xlu1  ;;  %v835_v52 = vld [vmem:[%s3483_s1 + $0x78] sm:$0xff] }
 0x16b   :  { %v578_v62 = vpop.trf.xlu0 }
 0x16c   :  { %2444 = vmatmul.mubr.msk.f32.vlgmr.msra.gmra.mxu1 %vm335_vm1, %v450_v55 }
 0x16d   :  { %2450 = vmatpush3.msra.mxu1 %v275_v57  ;;  %2446 = vmatprep.mubr.msk.f32.mxu1 %vm335_vm1, %v451_v58  ;;  %v708_v2 = vpop.trf.xlu1 }
 0x16e   :  { %2457 = vmatprep.subr.mxu1 %v280_v0 }
 0x16f   :  { %v579_v1 = vpop.trf.xlu0 }
 0x170   :  { %2447 = vmatmul.mubr.msk.f32.gmra.mxu1 %vm335_vm1, %v452_v61  ;;  %v830_v61 = vld [vmem:[%s3483_s1 + $0x50] sm:$0xff] }
 0x171   :  { %2451 = vmatprep.mubr.msk.f32.mxu1 %vm335_vm1, %v578_v62  ;;  %v709_v5 = vpop.trf.xlu1 }
 0x173   :  { %v580_v3 = vpop.trf.xlu0 }
 0x174   :  { %2452 = vmatmul.mubr.msk.f32.vlgmr.msra.gmra.mxu1 %vm335_vm1, %v579_v1 }
 0x175   :  { %2458 = vmatpush3.msra.mxu1 %v280_v0  ;;  %2454 = vmatprep.mubr.msk.f32.mxu1 %vm335_vm1, %v580_v3  ;;  %v710_v6 = vpop.trf.xlu1 }
 0x177   :  { %v581_v4 = vpop.trf.xlu0 }
 0x178   :  { %2455 = vmatmul.mubr.msk.f32.gmra.mxu1 %vm335_vm1, %v581_v4 }
 0x179   :  { %2459 = vmatprep.mubr.msk.f32.mxu1 %vm335_vm1, %v707_v63  ;;  %v834_v63 = vld [vmem:[%s3483_s1 + $0x70] sm:$0xff] }
 0x17c   :  { %2460 = vmatmul.mubr.msk.f32.vlgmr.msra.gmra.mxu1 %vm335_vm1, %v708_v2 }
 0x17d   :  { %2462 = vmatprep.mubr.msk.f32.mxu1 %vm335_vm1, %v709_v5  ;;  %v829_v5 = vld [vmem:[%s3483_s1 + $0x48] sm:$0xff] }
 0x180   :  { %2463 = vmatmul.mubr.msk.f32.gmra.mxu1 %vm335_vm1, %v710_v6 }
 0x220   :  { %v2437_v9 = vpop.f32.mrf.mxu1 }
 0x221   :  { %v2973_v44 = vadd.f32 %v2437_v9, %v821_v40  ;;  %v828_v9 = vld [vmem:[%s3483_s1 + $0x40] sm:$0xff] }
 0x222   :  { %v414_v10 = vpop.f32.mrf.mxu1 }
 0x223   :  { %v2991_v53 = vadd.f32 %v820_v46, %v414_v10  ;;  %v856_v54 = vsel %vm852_vm2, %v2973_v44, -inf }
 0x225   :  { %v853_v0 = vsel %vm852_vm2, %v2991_v53, -inf }
 0x228   :  { %v2440_v12 = vpop.f32.mrf.mxu1 }
 0x229   :  { %v2930_v13 = vadd.f32 %v2440_v12, %v823_v11 }
 0x22a   :  { %v424_v14 = vpop.f32.mrf.mxu1 }
 0x22b   :  { %v862_v18 = vsel %vm852_vm2, %v2930_v13, -inf  ;;  %v2965_v39 = vadd.f32 %v822_v35, %v424_v14  ;;  %v78_v14 = vld [vmem:[%s3485_s3 + $0x48] sm:$0xff] }
 0x22c   :  { %863 = vmax.xlane.f32.xlu1 %v862_v18  ;;  %v2445_v20 = vpop.f32.mrf.mxu1 }
 0x22d   :  { %v2940_v23 = vadd.f32 %v2445_v20, %v825_v16  ;;  %v859_v45 = vsel %vm852_vm2, %v2965_v39, -inf }
 0x22e   :  { %v543_v24 = vpop.f32.mrf.mxu1 }
 0x22f   :  { %v2945_v26 = vadd.f32 %v824_v22, %v543_v24  ;;  %v868_v27 = vsel %vm852_vm2, %v2940_v23, -inf }
 0x230   :  { %869 = vmax.xlane.f32.xlu1 %v868_v27  ;;  %v2448_v28 = vpop.f32.mrf.mxu1 }
 0x231   :  { %v2952_v30 = vadd.f32 %v2448_v28, %v827_v25  ;;  %v865_v33 = vsel %vm852_vm2, %v2945_v26, -inf }
 0x232   :  { %v553_v31 = vpop.f32.mrf.mxu1 }
 0x233   :  { %v2954_v32 = vadd.f32 %v826_v29, %v553_v31  ;;  %v874_v34 = vsel %vm852_vm2, %v2952_v30, -inf }
 0x234   :  { %866 = vmax.xlane.f32.xlu1 %v865_v33  ;;  %875 = vmax.xlane.f32.xlu0 %v874_v34  ;;  %v2453_v36 = vpop.f32.mrf.mxu1 }
 0x235   :  { %v871_v37 = vsel %vm852_vm2, %v2954_v32, -inf  ;;  %v845_v6 = vadd.f32 %v2453_v36, %v829_v5 }
 0x236   :  { %v672_v38 = vpop.f32.mrf.mxu1 }
 0x237   :  { %v3031_v10 = vadd.f32 %v828_v9, %v672_v38  ;;  %v880_v11 = vsel %vm852_vm2, %v845_v6, -inf }
 0x238   :  { %872 = vmax.xlane.f32.xlu0 %v871_v37  ;;  %v2456_v41 = vpop.f32.mrf.mxu1 }
 0x239   :  { %v2999_v58 = vadd.f32 %v2456_v41, %v831_v50  ;;  %v877_v12 = vsel %vm852_vm2, %v3031_v10, -inf }
 0x23a   :  { %v682_v42 = vpop.f32.mrf.mxu1 }
 0x23b   :  { %v3013_v1 = vadd.f32 %v830_v61, %v682_v42  ;;  %v886_v2 = vsel %vm852_vm2, %v2999_v58, -inf }
 0x23c   :  { %860 = vmax.xlane.f32.xlu0 %v859_v45  ;;  %v2461_v47 = vpop.f32.mrf.mxu1 }
 0x23d   :  { %v2983_v49 = vadd.f32 %v2461_v47, %v833_v43  ;;  %v883_v7 = vsel %vm852_vm2, %v3013_v1, -inf }
 0x23e   :  { %v801_v51 = vpop.f32.mrf.mxu1 }
 0x23f   :  { %v892_v55 = vsel %vm852_vm2, %v2983_v49, -inf  ;;  %v2997_v56 = vadd.f32 %v832_v48, %v801_v51 }
 0x240   :  { %857 = vmax.xlane.f32.xlu0 %v856_v54  ;;  %893 = vmax.xlane.f32.xlu1 %v892_v55  ;;  %v2464_v57 = vpop.f32.mrf.mxu1 }
 0x241   :  { %v889_v59 = vsel %vm852_vm2, %v2997_v56, -inf  ;;  %v3003_v60 = vadd.f32 %v2464_v57, %v835_v52 }
 0x242   :  { %v811_v62 = vpop.f32.mrf.mxu1 }
 0x243   :  { %v898_v3 = vsel %vm852_vm2, %v3003_v60, -inf  ;;  %v3019_v4 = vadd.f32 %v834_v63, %v811_v62 }
 0x244   :  { %854 = vmax.xlane.f32.xlu0 %v853_v0  ;;  %890 = vmax.xlane.f32.xlu1 %v889_v59 }
 0x245   :  { %v895_v8 = vsel %vm852_vm2, %v3019_v4, -inf }
 0x248   :  { %887 = vmax.xlane.f32.xlu0 %v886_v2  ;;  %899 = vmax.xlane.f32.xlu1 %v898_v3 }
 0x24c   :  { %884 = vmax.xlane.f32.xlu0 %v883_v7  ;;  %896 = vmax.xlane.f32.xlu1 %v895_v8 }
 0x250   :  { %881 = vmax.xlane.f32.xlu0 %v880_v11 }
 0x254   :  { %878 = vmax.xlane.f32.xlu0 %v877_v12 }
 0x25d   :  { %128 = vperm.xlu1 %2608, %v78_v14  }
 0x2b5   :  { %v864_v16 = vpop.xlane.xlu1 %863 }
 0x2b9   :  { %v870_v18 = vpop.xlane.xlu1 %869 }
 0x2ba   :  { %v906_v20 = vsub.f32 %v2940_v23, %v870_v18 }
 0x2bc   :  { %v927_v22 = vmul.f32 1.442695, %v906_v20 }
 0x2bd   :  { %v867_v24 = vpop.xlane.xlu1 %866  ;;  %v876_v25 = vpop.xlane.xlu0 %875 }
 0x2be   :  { %2609 = vpow2.f32 %v927_v22  ;;  %v905_v27 = vsub.f32 %v2945_v26, %v867_v24  ;;  %v908_v28 = vsub.f32 %v2952_v30, %v876_v25  ;;  %v904_v30 = vsub.f32 %v2930_v13, %v864_v16 }
 0x2bf   :  { %v2712_v16 = vmov 0.0  }
 0x2c0   :  { %v925_v29 = vmul.f32 1.442695, %v905_v27  ;;  %v931_v31 = vmul.f32 1.442695, %v908_v28  ;;  %v923_v46 = vmul.f32 1.442695, %v904_v30  ;;  %2476 = vmatprep.subr.mxu0 %v2712_v16  ;;  %2465 = vmatprep.subr.mxu1 %v2712_v16 }
 0x2c1   :  { %v873_v33 = vpop.xlane.xlu0 %872  ;;  %2484 = vmatprep.mubr.msk.f32.mxu0 %vm2713_vm3, %v2712_v16  ;;  %2473 = vmatprep.mubr.msk.f32.mxu1 %vm2713_vm3, %v2712_v16 }
 0x2c2   :  { %2611 = vpow2.f32 %v925_v29  ;;  %v907_v34 = vsub.f32 %v2954_v32, %v873_v33 }
 0x2c3   :  { %2613 = vpow2.f32 %v931_v31 }
 0x2c4   :  { %v929_v35 = vmul.f32 1.442695, %v907_v34 }
 0x2c5   :  { %v861_v36 = vpop.xlane.xlu0 %860 }
 0x2c6   :  { %2615 = vpow2.f32 %v929_v35  ;;  %v903_v47 = vsub.f32 %v2965_v39, %v861_v36 }
 0x2c8   :  { %v921_v51 = vmul.f32 1.442695, %v903_v47 }
 0x2c9   :  { %v858_v37 = vpop.xlane.xlu0 %857  ;;  %v894_v12 = vpop.xlane.xlu1 %893 }
 0x2ca   :  { %v902_v23 = vsub.f32 %v2973_v44, %v858_v37  ;;  %v914_v25 = vsub.f32 %v2983_v49, %v894_v12 }
 0x2cb   :  { %v3044_v38 = vpop.eup %2609 }
 0x2cc   :  { %v919_v40 = vmul.f32 1.442695, %v902_v23  ;;  %v964_v26 = vsel %vm852_vm2, %v3044_v38, 0.0  ;;  %v943_v31 = vmul.f32 1.442695, %v914_v25 }
 0x2cd   :  { %965 = vadd.xlane.f32.xlu1 %v964_v26  ;;  %v855_v41 = vpop.xlane.xlu0 %854  ;;  %v891_v24 = vpop.xlane.xlu1 %890  ;;  %v77_v26 = vld [vmem:[%s3485_s3 + $0x40] sm:$0xff] }
 0x2ce   :  { %v901_v42 = vsub.f32 %v2991_v53, %v855_v41  ;;  %2617 = vpow2.f32 %v919_v40  ;;  %v913_v33 = vsub.f32 %v2997_v56, %v891_v24 }
 0x2cf   :  { %v3050_v32 = vpop.eup %2611 }
 0x2d0   :  { %v917_v43 = vmul.f32 1.442695, %v901_v42  ;;  %v961_v45 = vsel %vm852_vm2, %v3050_v32, 0.0  ;;  %v3054_v44 = vpop.eup %2613  ;;  %v941_v35 = vmul.f32 1.442695, %v913_v33 }
 0x2d1   :  { %962 = vadd.xlane.f32.xlu1 %v961_v45  ;;  %v888_v48 = vpop.xlane.xlu0 %887  ;;  %v970_v13 = vsel %vm852_vm2, %v3054_v44, 0.0  ;;  %v900_v29 = vpop.xlane.xlu1 %899  ;;  %v1374_v45 = vld [vmem:[%s3487_s5 + $0x8] sm:$0xff] }
 0x2d2   :  { %2619 = vpow2.f32 %v917_v43  ;;  %v912_v59 = vsub.f32 %v2999_v58, %v888_v48  ;;  %v916_v36 = vsub.f32 %v3003_v60, %v900_v29  ;;  %v1775_v48 = vld [vmem:[%s3490_s8 + $0x38] sm:$0xff] }
 0x2d3   :  { %v3059_v50 = vpop.eup %2615  ;;  %2621 = vpow2.f32 %v923_v46 }
 0x2d4   :  { %v967_v53 = vsel %vm852_vm2, %v3059_v50, 0.0  ;;  %2623 = vpow2.f32 %v921_v51  ;;  %v939_v3 = vmul.f32 1.442695, %v912_v59  ;;  %v947_v37 = vmul.f32 1.442695, %v916_v36  ;;  %v1771_v51 = vld [vmem:[%s3490_s8 + $0x18] sm:$0xff] }
 0x2d5   :  { %971 = vadd.xlane.f32.xlu1 %v970_v13  ;;  %v885_v52 = vpop.xlane.xlu0 %884  ;;  %v897_v49 = vpop.xlane.xlu1 %896  ;;  %v1773_v13 = vld [vmem:[%s3490_s8 + $0x28] sm:$0xff]  ;;  %v1373_v59 = vld [vmem:[%s3487_s5] sm:$0xff] }
 0x2d6   :  { %v911_v5 = vsub.f32 %v3013_v1, %v885_v52  ;;  %v915_v56 = vsub.f32 %v3019_v4, %v897_v49  ;;  %v1376_v4 = vld [vmem:[%s3487_s5 + $0x18] sm:$0xff]  ;;  %v1769_v52 = vld [vmem:[%s3490_s8 + $0x8] sm:$0xff] }
 0x2d8   :  { %v937_v58 = vmul.f32 1.442695, %v911_v5  ;;  %v945_v23 = vmul.f32 1.442695, %v915_v56  ;;  %v1952_v5 = vld [vmem:[%s3491_s9 + $0x38] sm:$0xff] }
 0x2d9   :  { %968 = vadd.xlane.f32.xlu1 %v967_v53  ;;  %v882_v54 = vpop.xlane.xlu0 %881  ;;  %v79_v53 = vld [vmem:[%s3485_s3 + $0x50] sm:$0xff] }
 0x2da   :  { %v910_v55 = vsub.f32 %v845_v6, %v882_v54  ;;  %v1951_v54 = vld [vmem:[%s3491_s9 + $0x30] sm:$0xff] }
 0x2db   :  { %v3063_v39 = vpop.eup %2617 }
 0x2dc   :  { %v935_v57 = vmul.f32 1.442695, %v910_v55  ;;  %v952_v61 = vsel %vm852_vm2, %v3063_v39, 0.0  ;;  %v1375_v55 = vld [vmem:[%s3487_s5 + $0x10] sm:$0xff] }
 0x2dd   :  { %v879_v62 = vpop.xlane.xlu0 %878  ;;  %953 = vadd.xlane.f32.xlu0 %v952_v61  ;;  %v2006_v61 = vld [vmem:[%s3492_s10 + $0x28] sm:$0xff] }
 0x2de   :  { %2625 = vpow2.f32 %v935_v57  ;;  %v909_v63 = vsub.f32 %v3031_v10, %v879_v62  ;;  %v80_v10 = vld [vmem:[%s3485_s3 + $0x58] sm:$0xff]  ;;  %v2007_v57 = vld [vmem:[%s3492_s10 + $0x30] sm:$0xff] }
 0x2df   :  { %v3069_v0 = vpop.eup %2619  ;;  %v1774_v62 = vld [vmem:[%s3490_s8 + $0x30] sm:$0xff] }
 0x2e0   :  { %v933_v2 = vmul.f32 1.442695, %v909_v63  ;;  %v949_v6 = vsel %vm852_vm2, %v3069_v0, 0.0  ;;  %v3074_v7 = vpop.eup %2621  ;;  %v1772_v63 = vld [vmem:[%s3490_s8 + $0x20] sm:$0xff] }
 0x2e1   :  { %950 = vadd.xlane.f32.xlu0 %v949_v6  ;;  %v958_v8 = vsel %vm852_vm2, %v3074_v7, 0.0  ;;  %v3078_v9 = vpop.eup %2623  ;;  %v2008_v6 = vld [vmem:[%s3492_s10 + $0x38] sm:$0xff] }
 0x2e2   :  { %2627 = vpow2.f32 %v933_v2  ;;  %v955_v1 = vsel %vm852_vm2, %v3078_v9, 0.0  ;;  %v1770_v2 = vld [vmem:[%s3490_s8 + $0x10] sm:$0xff] }
 0x2e3   :  { %2629 = vpow2.f32 %v939_v3  ;;  %v1768_v3 = vld [vmem:[%s3490_s8] sm:$0xff] }
 0x2e4   :  { %2631 = vpow2.f32 %v937_v58  ;;  %v1950_v58 = vld [vmem:[%s3491_s9 + $0x28] sm:$0xff] }
 0x2e5   :  { %959 = vadd.xlane.f32.xlu0 %v958_v8  ;;  %2633 = vpow2.f32 %v943_v31  ;;  %v1949_v8 = vld [vmem:[%s3491_s9 + $0x20] sm:$0xff] }
 0x2e6   :  { %2635 = vpow2.f32 %v941_v35 }
 0x2e7   :  { %2637 = vpow2.f32 %v947_v37 }
 0x2e8   :  { %2639 = vpow2.f32 %v945_v23  ;;  %v2429_v23 = vpop.f32.mrf.mxu0 }
 0x2e9   :  { %956 = vadd.xlane.f32.xlu0 %v955_v1  ;;  %v1948_v1 = vld [vmem:[%s3491_s9 + $0x18] sm:$0xff] }
 0x2ea   :  { %138 = vperm.xlu1 %2608, %v80_v10   ;;  %v129_v10 = vpop.permute.xlu1 %128 }
 0x2eb   :  { %v3085_v11 = vpop.eup %2625 }
 0x2ec   :  { %v976_v14 = vsel %vm852_vm2, %v3085_v11, 0.0 }
 0x2ed   :  { %977 = vadd.xlane.f32.xlu0 %v976_v14 }
 0x2ef   :  { %v3091_v18 = vpop.eup %2627 }
 0x2f0   :  { %v973_v20 = vsel %vm852_vm2, %v3091_v18, 0.0  ;;  %v3095_v22 = vpop.eup %2629 }
 0x2f1   :  { %974 = vadd.xlane.f32.xlu0 %v973_v20  ;;  %v982_v27 = vsel %vm852_vm2, %v3095_v22, 0.0  ;;  %v3100_v28 = vpop.eup %2631 }
 0x2f2   :  { %v979_v34 = vsel %vm852_vm2, %v3100_v28, 0.0  ;;  %v3111_v40 = vpop.eup %2633 }
 0x2f3   :  { %v988_v60 = vsel %vm852_vm2, %v3111_v40, 0.0  ;;  %v3118_v30 = vpop.eup %2635 }
 0x2f4   :  { %v985_v41 = vsel %vm852_vm2, %v3118_v30, 0.0  ;;  %v3125_v42 = vpop.eup %2637 }
 0x2f5   :  { %983 = vadd.xlane.f32.xlu0 %v982_v27  ;;  %v994_v43 = vsel %vm852_vm2, %v3125_v42, 0.0  ;;  %v3132_v46 = vpop.eup %2639 }
 0x2f6   :  { %v991_v47 = vsel %vm852_vm2, %v3132_v46, 0.0 }
 0x2f9   :  { %980 = vadd.xlane.f32.xlu0 %v979_v34 }
 0x30e   :  { %989 = vadd.xlane.f32.xlu1 %v988_v60 }
 0x30f   :  { %123 = vperm.xlu0 %2607, %v77_v26   ;;  %v290_v26 = vadd.f32 %v2429_v23, %v129_v10 }
 0x312   :  { %986 = vadd.xlane.f32.xlu1 %v985_v41 }
 0x313   :  { %1394 = vperm.xlu0 %2607, %v1376_v4  }
 0x316   :  { %995 = vadd.xlane.f32.xlu1 %v994_v43 }
 0x317   :  { %1384 = vperm.xlu0 %2607, %v1374_v45  }
 0x31a   :  { %992 = vadd.xlane.f32.xlu1 %v991_v47 }
 0x31b   :  { %1813 = vperm.xlu0 %2607, %v1775_v48  }
 0x31f   :  { %1803 = vperm.xlu0 %2607, %v1773_v13  }
 0x323   :  { %1793 = vperm.xlu0 %2607, %v1771_v51   ;;  %v284_v51 = vpop.f32.mrf.mxu0 }
 0x327   :  { %1783 = vperm.xlu0 %2607, %v1769_v52  }
 0x32b   :  { %133 = vperm.xlu1 %2608, %v79_v53   ;;  %1985 = vperm.xlu0 %2607, %v1951_v54  }
 0x32f   :  { %1389 = vperm.xlu1 %2608, %v1375_v55   ;;  %2041 = vperm.xlu0 %2607, %v2007_v57  }
 0x333   :  { %1379 = vperm.xlu1 %2608, %v1373_v59   ;;  %2036 = vperm.xlu0 %2607, %v2006_v61  }
 0x337   :  { %1808 = vperm.xlu1 %2608, %v1774_v62  }
 0x33b   :  { %1798 = vperm.xlu1 %2608, %v1772_v63  }
 0x33f   :  { %1788 = vperm.xlu1 %2608, %v1770_v2   ;;  %v2432_v2 = vpop.f32.mrf.mxu0 }
 0x343   :  { %1778 = vperm.xlu1 %2608, %v1768_v3  }
 0x347   :  { %1990 = vperm.xlu1 %2608, %v1952_v5   ;;  %v294_v5 = vpop.f32.mrf.mxu0 }
 0x34b   :  { %2046 = vperm.xlu1 %2608, %v2008_v6  }
 0x34f   :  { %1980 = vperm.xlu1 %2608, %v1950_v58  }
 0x353   :  { %1975 = vperm.xlu1 %2608, %v1949_v8  }
 0x356   :  { %v966_v12 = vpop.xlane.xlu1 %965 }
 0x357   :  { %1970 = vperm.xlu1 %2608, %v1948_v1  }
 0x35a   :  { %v963_v14 = vpop.xlane.xlu1 %962 }
 0x35e   :  { %v972_v20 = vpop.xlane.xlu1 %971 }
 0x35f   :  { %2641 = vrcp.f32 %v972_v20 }
 0x362   :  { %v969_v24 = vpop.xlane.xlu1 %968 }
 0x363   :  { %2643 = vrcp.f32 %v969_v24 }
 0x364   :  { %2645 = vrcp.f32 %v966_v12 }
 0x365   :  { %2647 = vrcp.f32 %v963_v14 }
 0x366   :  { %v954_v25 = vpop.xlane.xlu0 %953  ;;  %v139_v57 = vpop.permute.xlu1 %138 }
 0x367   :  { %v300_v20 = vadd.f32 %v2432_v2, %v139_v57 }
 0x36a   :  { %v951_v27 = vpop.xlane.xlu0 %950 }
 0x36c   :  { %v2642_v29 = vpop.eup %2641 }
 0x36d   :  { %v1012_v31 = vmul.f32 %v2642_v29, %v3054_v44  ;;  %v1372_v29 = vld [vmem:[%s3486_s4 + $0x18] sm:$0xff] }
 0x36e   :  { %v960_v33 = vpop.xlane.xlu0 %959 }
 0x36f   :  { %2477 = vmatpush3.xpose.msk.msra.mxu0 %vm852_vm2, %v1012_v31  ;;  %2649 = vrcp.f32 %v960_v33  ;;  %v1502_v31 = vld [vmem:[%s3489_s7] sm:$0xff]  ;;  %v1503_v33 = vld [vmem:[%s3489_s7 + $0x8] sm:$0xff] }
 0x370   :  { %v2644_v34 = vpop.eup %2643  ;;  %2478 = vmatprep.subr.mxu0 %v2712_v16 }
 0x371   :  { %v1010_v35 = vmul.f32 %v2644_v34, %v3059_v50  ;;  %v2646_v36 = vpop.eup %2645  ;;  %v1494_v34 = vld [vmem:[%s3488_s6] sm:$0xff] }
 0x372   :  { %v957_v49 = vpop.xlane.xlu0 %956  ;;  %v1008_v37 = vmul.f32 %v2646_v36, %v3044_v38  ;;  %v2648_v56 = vpop.eup %2647  ;;  %v1505_v36 = vld [vmem:[%s3489_s7 + $0x18] sm:$0xff] }
 0x373   :  { %2479 = vmatpush3.xpose.msk.msra.mxu0 %vm852_vm2, %v1010_v35  ;;  %2651 = vrcp.f32 %v957_v49  ;;  %v1006_v60 = vmul.f32 %v2648_v56, %v3050_v32  ;;  %v1504_v35 = vld [vmem:[%s3489_s7 + $0x10] sm:$0xff]  ;;  %v1506_v49 = vld [vmem:[%s3489_s7 + $0x20] sm:$0xff] }
 0x374   :  { %2480 = vmatprep.subr.mxu0 %v2712_v16  ;;  %2653 = vrcp.f32 %v954_v25  ;;  %v1508_v56 = vld [vmem:[%s3489_s7 + $0x30] sm:$0xff] }
 0x375   :  { %2655 = vrcp.f32 %v951_v27 }
 0x376   :  { %v978_v44 = vpop.xlane.xlu0 %977 }
 0x377   :  { %2481 = vmatpush3.xpose.msk.msra.mxu0 %vm852_vm2, %v1008_v37  ;;  %v1507_v37 = vld [vmem:[%s3489_s7 + $0x28] sm:$0xff] }
 0x378   :  { %2482 = vmatprep.subr.mxu0 %v2712_v16 }
 0x37a   :  { %v975_v50 = vpop.xlane.xlu0 %974 }
 0x37b   :  { %2483 = vmatpush3.xpose.msk.msra.mxu0 %vm852_vm2, %v1006_v60 }
 0x37c   :  { %2498 = vmatprep.subr.mxu0 %v2712_v16  ;;  %v2650_v41 = vpop.eup %2649 }
 0x37d   :  { %v1004_v38 = vmul.f32 %v2650_v41, %v3074_v7 }
 0x37e   :  { %2485 = vmatmul.mubr.msk.f32.vlgmr.msra.gmra.mxu0 %vm852_vm2, %v290_v26  ;;  %v984_v4 = vpop.xlane.xlu0 %983 }
 0x37f   :  { %2506 = vmatprep.mubr.msk.f32.mxu0 %vm2713_vm3, %v2712_v16  ;;  %2657 = vrcp.f32 %v984_v4  ;;  %2466 = vmatpush3.xpose.msk.msra.mxu1 %vm852_vm2, %v1004_v38 }
 0x380   :  { %v2652_v32 = vpop.eup %2651  ;;  %2467 = vmatprep.subr.mxu1 %v2712_v16 }
 0x381   :  { %v1002_v43 = vmul.f32 %v2652_v32, %v3078_v9  ;;  %v2654_v45 = vpop.eup %2653 }
 0x382   :  { %v981_v47 = vpop.xlane.xlu0 %980  ;;  %v1000_v7 = vmul.f32 %v2654_v45, %v3063_v39  ;;  %v2656_v48 = vpop.eup %2655 }
 0x383   :  { %2659 = vrcp.f32 %v981_v47  ;;  %2468 = vmatpush3.xpose.msk.msra.mxu1 %vm852_vm2, %v1002_v43  ;;  %v998_v13 = vmul.f32 %v2656_v48, %v3069_v0  ;;  %v1495_v48 = vld [vmem:[%s3488_s6 + $0x8] sm:$0xff] }
 0x384   :  { %2469 = vmatprep.subr.mxu1 %v2712_v16  ;;  %2661 = vrcp.f32 %v978_v44  ;;  %v1509_v44 = vld [vmem:[%s3489_s7 + $0x38] sm:$0xff] }
 0x385   :  { %2663 = vrcp.f32 %v975_v50 }
 0x387   :  { %2470 = vmatpush3.xpose.msk.msra.mxu1 %vm852_vm2, %v1000_v7 }
 0x388   :  { %2471 = vmatprep.subr.mxu1 %v2712_v16 }
 0x38a   :  { %v124_v9 = vpop.permute.xlu0 %123 }
 0x38b   :  { %v285_v52 = vadd.f32 %v284_v51, %v124_v9  ;;  %2472 = vmatpush3.xpose.msk.msra.mxu1 %vm852_vm2, %v998_v13  ;;  %v1496_v13 = vld [vmem:[%s3488_s6 + $0x10] sm:$0xff]  ;;  %v1497_v51 = vld [vmem:[%s3488_s6 + $0x18] sm:$0xff]  ;;  %v1498_v9 = vld [vmem:[%s3488_s6 + $0x20] sm:$0xff] }
 0x38c   :  { %v2658_v53 = vpop.eup %2657  ;;  %2487 = vmatprep.subr.mxu1 %v2712_v16 }
 0x38d   :  { %v1020_v54 = vmul.f32 %v2658_v53, %v3095_v22  ;;  %v1500_v53 = vld [vmem:[%s3488_s6 + $0x30] sm:$0xff] }
 0x38e   :  { %2474 = vmatmul.mubr.msk.f32.vlgmr.msra.gmra.mxu1 %vm852_vm2, %v285_v52  ;;  %v1395_v60 = vpop.permute.xlu0 %1394  ;;  %v1499_v52 = vld [vmem:[%s3488_s6 + $0x28] sm:$0xff] }
 0x38f   :  { %2488 = vmatpush3.xpose.msk.msra.mxu1 %vm852_vm2, %v1020_v54  ;;  %2495 = vmatprep.mubr.msk.f32.mxu1 %vm2713_vm3, %v2712_v16  ;;  %v1501_v54 = vld [vmem:[%s3488_s6 + $0x38] sm:$0xff] }
 0x390   :  { %v2660_v39 = vpop.eup %2659  ;;  %2489 = vmatprep.subr.mxu1 %v2712_v16 }
 0x391   :  { %v1018_v0 = vmul.f32 %v2660_v39, %v3100_v28  ;;  %v2662_v55 = vpop.eup %2661 }
 0x392   :  { %v1016_v22 = vmul.f32 %v2662_v55, %v3085_v11  ;;  %v2664_v59 = vpop.eup %2663  ;;  %v1385_v43 = vpop.permute.xlu0 %1384 }
 0x393   :  { %2490 = vmatpush3.xpose.msk.msra.mxu1 %vm852_vm2, %v1018_v0  ;;  %v1014_v62 = vmul.f32 %v2664_v59, %v3091_v18 }
 0x394   :  { %2491 = vmatprep.subr.mxu1 %v2712_v16 }
 0x396   :  { %v3335_v39 = vpop.permute.xlu0 %1813 }
 0x397   :  { %v990_v61 = vpop.xlane.xlu1 %989  ;;  %2492 = vmatpush3.xpose.msk.msra.mxu1 %vm852_vm2, %v1016_v22 }
 0x398   :  { %2493 = vmatprep.subr.mxu1 %v2712_v16 }
 0x39a   :  { %v1804_v55 = vpop.permute.xlu0 %1803 }
 0x39b   :  { %v987_v63 = vpop.xlane.xlu1 %986  ;;  %2494 = vmatpush3.xpose.msk.msra.mxu1 %vm852_vm2, %v1014_v62 }
 0x39f   :  { %v996_v28 = vpop.xlane.xlu1 %995 }
 0x3a0   :  { %2665 = vrcp.f32 %v996_v28 }
 0x3a3   :  { %v993_v3 = vpop.xlane.xlu1 %992 }
 0x3a4   :  { %2667 = vrcp.f32 %v993_v3 }
 0x3a5   :  { %2669 = vrcp.f32 %v990_v61  ;;  %v1794_v61 = vpop.permute.xlu0 %1793 }
 0x3a6   :  { %2671 = vrcp.f32 %v987_v63 }
 0x3a7   :  { %v134_v6 = vpop.permute.xlu1 %133 }
 0x3a8   :  { %v295_v11 = vadd.f32 %v294_v5, %v134_v6 }
 0x3a9   :  { %v1784_v2 = vpop.permute.xlu0 %1783 }
 0x3aa   :  { %2496 = vmatmul.mubr.msk.f32.vlgmr.msra.gmra.mxu1 %vm852_vm2, %v295_v11 }
 0x3ab   :  { %v1390_v26 = vpop.permute.xlu1 %1389 }
 0x3ad   :  { %v2666_v58 = vpop.eup %2665 }
 0x3ae   :  { %v1028_v8 = vmul.f32 %v2666_v58, %v3125_v42 }
 0x3af   :  { %v1380_v47 = vpop.permute.xlu1 %1379 }
 0x3b0   :  { %2499 = vmatpush3.xpose.msk.msra.mxu0 %vm852_vm2, %v1028_v8 }
 0x3b1   :  { %v2668_v18 = vpop.eup %2667  ;;  %2500 = vmatprep.subr.mxu0 %v2712_v16 }
 0x3b2   :  { %v1026_v10 = vmul.f32 %v2668_v18, %v3132_v46  ;;  %v2670_v1 = vpop.eup %2669 }
 0x3b3   :  { %v1024_v12 = vmul.f32 %v2670_v1, %v3111_v40  ;;  %v2672_v14 = vpop.eup %2671  ;;  %v1809_v0 = vpop.permute.xlu1 %1808 }
 0x3b4   :  { %2501 = vmatpush3.xpose.msk.msra.mxu0 %vm852_vm2, %v1026_v10  ;;  %v1022_v42 = vmul.f32 %v2672_v14, %v3118_v30 }
 0x3b5   :  { %2502 = vmatprep.subr.mxu0 %v2712_v16 }
 0x3b7   :  { %v1799_v22 = vpop.permute.xlu1 %1798 }
 0x3b8   :  { %2503 = vmatpush3.xpose.msk.msra.mxu0 %vm852_vm2, %v1024_v12 }
 0x3b9   :  { %2504 = vmatprep.subr.mxu0 %v2712_v16  ;;  %v1369_v16 = vld [vmem:[%s3486_s4] sm:$0xff] }
 0x3ba   :  { %2517 = vmatprep.mubr.msk.f32.mxu1 %vm852_vm2, %v1369_v16 }
 0x3bb   :  { %v1789_v62 = vpop.permute.xlu1 %1788 }
 0x3bc   :  { %2505 = vmatpush3.xpose.msk.msra.mxu0 %vm852_vm2, %v1022_v42 }
 0x3bd   :  { %2523 = vmatprep.subr.mxu0 %v2833_v15 }
 0x3bf   :  { %2507 = vmatmul.mubr.msk.f32.vlgmr.msra.gmra.mxu0 %vm852_vm2, %v300_v20  ;;  %v1779_v11 = vpop.permute.xlu1 %1778 }
 0x3c0   :  { %2524 = vmatpush3.msra.mxu0 %v2833_v15  ;;  %2531 = vmatprep.mubr.msk.f32.mxu0 %vm852_vm2, %v1502_v31 }
 0x3c1   :  { %2525 = vmatprep.subr.mxu0 %v2841_v17 }
 0x3c2   :  { %2526 = vmatpush3.msra.mxu0 %v2841_v17 }
 0x3c3   :  { %2527 = vmatprep.subr.mxu0 %v2851_v19 }
 0x3c4   :  { %2528 = vmatpush3.msra.mxu0 %v2851_v19  ;;  %v1370_v19 = vld [vmem:[%s3486_s4 + $0x8] sm:$0xff] }
 0x3c5   :  { %2529 = vmatprep.subr.mxu0 %v2861_v21 }
 0x3c6   :  { %2530 = vmatpush3.msra.mxu0 %v2861_v21  ;;  %v1371_v21 = vld [vmem:[%s3486_s4 + $0x10] sm:$0xff] }
 0x3c7   :  { %2532 = vmatmul.mubr.msk.f32.vlgmr.msra.gmra.mxu0 %vm852_vm2, %v1503_v33 }
 0x3c8   :  { %2534 = vmatprep.mubr.msk.f32.mxu0 %vm852_vm2, %v1504_v35 }
 0x3cb   :  { %2535 = vmatmul.mubr.msk.f32.gmra.mxu0 %vm852_vm2, %v1505_v36 }
 0x3cc   :  { %2537 = vmatprep.mubr.msk.f32.mxu0 %vm852_vm2, %v1506_v49 }
 0x3cf   :  { %2538 = vmatmul.mubr.msk.f32.gmra.mxu0 %vm852_vm2, %v1507_v37 }
 0x3d0   :  { %2540 = vmatprep.mubr.msk.f32.mxu0 %vm852_vm2, %v1508_v56 }
 0x3d3   :  { %2541 = vmatmul.mubr.msk.f32.gmra.mxu0 %vm852_vm2, %v1509_v44 }
 0x43e   :  { %v1195_v40 = vpop.f32.mrf.mxu0 }
 0x440   :  { %v2486_v15 = vpop.f32.mrf.mxu0 }
 0x44e   :  { %v1110_v30 = vpop.f32.mrf.mxu1 }
 0x450   :  { %v2475_v46 = vpop.f32.mrf.mxu1 }
 0x46a   :  { %v1280_v24 = vpop.f32.mrf.mxu1 }
 0x46c   :  { %v2497_v17 = vpop.f32.mrf.mxu1 }
 0x47f   :  { %v1365_v25 = vpop.f32.mrf.mxu0 }
 0x480   :  { %2509 = vmatprep.subr.mxu1 %v1365_v25 }
 0x481   :  { %v2508_v27 = vpop.f32.mrf.mxu0  ;;  %2510 = vmatpush3.msra.mxu1 %v1365_v25 }
 0x482   :  { %2511 = vmatprep.subr.mxu1 %v1280_v24 }
 0x483   :  { %2512 = vmatpush3.msra.mxu1 %v1280_v24 }
 0x484   :  { %2513 = vmatprep.subr.mxu1 %v1195_v40 }
 0x485   :  { %2514 = vmatpush3.msra.mxu1 %v1195_v40 }
 0x486   :  { %2515 = vmatprep.subr.mxu1 %v1110_v30 }
 0x487   :  { %2516 = vmatpush3.msra.mxu1 %v1110_v30  ;;  %v2533_v57 = vpop.f32.mrf.mxu0 }
 0x488   :  { %2518 = vmatmul.mubr.msk.f32.vlgmr.msra.gmra.mxu1 %vm852_vm2, %v1370_v19 }
 0x489   :  { %2520 = vmatprep.mubr.msk.f32.mxu1 %vm852_vm2, %v1371_v21  ;;  %v1600_v59 = vpop.f32.mrf.mxu0 }
 0x48b   :  { %v2536_v63 = vpop.f32.mrf.mxu0 }
 0x48c   :  { %2521 = vmatmul.mubr.msk.f32.gmra.mxu1 %vm852_vm2, %v1372_v29 }
 0x48d   :  { %2551 = vmatprep.mubr.msk.f32.mxu1 %vm852_vm2, %v1494_v34  ;;  %v1610_v6 = vpop.f32.mrf.mxu0 }
 0x48f   :  { %v2539_v10 = vpop.f32.mrf.mxu0 }
 0x491   :  { %v1620_v46 = vpop.f32.mrf.mxu0 }
 0x493   :  { %v2542_v34 = vpop.f32.mrf.mxu0 }
 0x548   :  { %v2519_v23 = vpop.f32.mrf.mxu1 }
 0x549   :  { %v1481_v45 = vadd.f32 %v2519_v23, %v1385_v43  ;;  %v1630_v23 = vpop.f32.mrf.mxu0 }
 0x54a   :  { %v1475_v50 = vpop.f32.mrf.mxu1 }
 0x54b   :  { %v1476_v7 = vadd.f32 %v1475_v50, %v1380_v47 }
 0x54c   :  { %v2522_v41 = vpop.f32.mrf.mxu1 }
 0x54d   :  { %v1491_v38 = vadd.f32 %v2522_v41, %v1395_v60 }
 0x54e   :  { %v1485_v4 = vpop.f32.mrf.mxu1 }
 0x54f   :  { %v1486_v32 = vadd.f32 %v1485_v4, %v1390_v26  ;;  %2543 = vmatprep.subr.mxu1 %v1491_v38 }
 0x550   :  { %2544 = vmatpush3.msra.mxu1 %v1491_v38 }
 0x551   :  { %2545 = vmatprep.subr.mxu1 %v1486_v32 }
 0x552   :  { %2546 = vmatpush3.msra.mxu1 %v1486_v32 }
 0x553   :  { %2547 = vmatprep.subr.mxu1 %v1481_v45 }
 0x554   :  { %2548 = vmatpush3.msra.mxu1 %v1481_v45 }
 0x555   :  { %2549 = vmatprep.subr.mxu1 %v1476_v7 }
 0x556   :  { %2550 = vmatpush3.msra.mxu1 %v1476_v7 }
 0x557   :  { %2552 = vmatmul.mubr.msk.f32.vlgmr.msra.gmra.mxu1 %vm852_vm2, %v1495_v48 }
 0x558   :  { %2554 = vmatprep.mubr.msk.f32.mxu1 %vm852_vm2, %v1496_v13 }
 0x55b   :  { %2555 = vmatmul.mubr.msk.f32.gmra.mxu1 %vm852_vm2, %v1497_v51 }
 0x55c   :  { %2557 = vmatprep.mubr.msk.f32.mxu1 %vm852_vm2, %v1498_v9 }
 0x55f   :  { %2558 = vmatmul.mubr.msk.f32.gmra.mxu1 %vm852_vm2, %v1499_v52 }
 0x560   :  { %2560 = vmatprep.mubr.msk.f32.mxu1 %vm852_vm2, %v1500_v53  ;;  %v1947_v53 = vld [vmem:[%s3491_s9 + $0x10] sm:$0xff] }
 0x563   :  { %2561 = vmatmul.mubr.msk.f32.gmra.mxu1 %vm852_vm2, %v1501_v54  ;;  %v2005_v54 = vld [vmem:[%s3492_s10 + $0x20] sm:$0xff] }
 0x617   :  { %v2553_v28 = vpop.f32.mrf.mxu1 }
 0x618   :  { %v1735_v3 = vadd.f32 %v2553_v28, %v2533_v57  ;;  %v2069_v57 = vld [vmem:[%s3494_s12] sm:$0xff] }
 0x619   :  { %v1729_v5 = vpop.f32.mrf.mxu1  ;;  %v2001_v28 = vld [vmem:[%s3492_s10] sm:$0xff] }
 0x61a   :  { %v3337_v58 = vadd.f32 %v1784_v2, %v1735_v3  ;;  %v1730_v8 = vadd.f32 %v1729_v5, %v1600_v59  ;;  %v2071_v59 = vld [vmem:[%s3494_s12 + $0x10] sm:$0xff]  ;;  %v2070_v2 = vld [vmem:[%s3494_s12 + $0x8] sm:$0xff]  ;;  %v2072_v3 = vld [vmem:[%s3494_s12 + $0x18] sm:$0xff]  ;;  %v1991_v5 = vpop.permute.xlu1 %1990 }
 0x61b   :  { %v2556_v18 = vpop.f32.mrf.mxu1 }
 0x61c   :  { %v3339_v1 = vadd.f32 %v1779_v11, %v1730_v8  ;;  %v1745_v12 = vadd.f32 %v2556_v18, %v2536_v63  ;;  %v1827_v14 = vsel %vm852_vm2, %v3337_v58, 0.0  ;;  %v1858_v42 = vmul.f32 %v3337_v58, %v3337_v58  ;;  %v1945_v63 = vld [vmem:[%s3491_s9] sm:$0xff]  ;;  %v3430_v11 = vpop.permute.xlu0 %1985 }
 0x61d   :  { %v1739_v20 = vpop.f32.mrf.mxu1  ;;  %1828 = vadd.xlane.f32.xlu0 %v1827_v14  ;;  %v2065_v18 = vld [vmem:[%s3493_s11] sm:$0xff] }
 0x61e   :  { %v3345_v16 = vadd.f32 %v1794_v61, %v1745_v12  ;;  %v1740_v40 = vadd.f32 %v1739_v20, %v1610_v6  ;;  %v1868_v15 = vsel %vm852_vm2, %v1858_v42, 0.0  ;;  %v1824_v25 = vsel %vm852_vm2, %v3339_v1, 0.0  ;;  %v2047_v6 = vpop.permute.xlu1 %2046  ;;  %2579 = vmatprep.mubr.msk.f32.mxu0 %vm2093_vm4, %v2065_v18 }
 0x61f   :  { %v2559_v30 = vpop.f32.mrf.mxu1  ;;  %1869 = vadd.xlane.f32.xlu1 %v1868_v15  ;;  %v1857_v49 = vmul.f32 %v3339_v1, %v3339_v1 }
 0x620   :  { %v3348_v24 = vadd.f32 %v1789_v62, %v1740_v40  ;;  %v1755_v17 = vadd.f32 %v2559_v30, %v2539_v10  ;;  %v1860_v27 = vmul.f32 %v3345_v16, %v3345_v16  ;;  %v1833_v36 = vsel %vm852_vm2, %v3345_v16, 0.0  ;;  %v1946_v62 = vld [vmem:[%s3491_s9 + $0x8] sm:$0xff]  ;;  %v2067_v10 = vld [vmem:[%s3493_s11 + $0x10] sm:$0xff]  ;;  %v3438_v12 = vpop.permute.xlu0 %2041 }
 0x621   :  { %v1749_v19 = vpop.f32.mrf.mxu1  ;;  %1825 = vadd.xlane.f32.xlu0 %v1824_v25  ;;  %v1865_v50 = vsel %vm852_vm2, %v1857_v49, 0.0  ;;  %2582 = vmatprep.mubr.msk.f32.mxu1 %vm2093_vm4, %v2067_v10 }
 0x622   :  { %v3354_v21 = vadd.f32 %v1804_v55, %v1755_v17  ;;  %v1750_v29 = vadd.f32 %v1749_v19, %v1620_v46  ;;  %v1874_v31 = vsel %vm852_vm2, %v1860_v27, 0.0  ;;  %v1859_v33 = vmul.f32 %v3348_v24, %v3348_v24  ;;  %v2002_v55 = vld [vmem:[%s3492_s10 + $0x8] sm:$0xff]  ;;  %v1981_v8 = vpop.permute.xlu1 %1980 }
 0x623   :  { %v2562_v35 = vpop.f32.mrf.mxu1  ;;  %1875 = vadd.xlane.f32.xlu1 %v1874_v31  ;;  %v1830_v4 = vsel %vm852_vm2, %v3348_v24, 0.0 }
 0x624   :  { %v3363_v37 = vadd.f32 %v1799_v22, %v1750_v29  ;;  %v1871_v56 = vsel %vm852_vm2, %v1859_v33, 0.0  ;;  %v1862_v44 = vmul.f32 %v3354_v21, %v3354_v21  ;;  %v1765_v45 = vadd.f32 %v2562_v35, %v2542_v34  ;;  %v2037_v42 = vpop.permute.xlu0 %2036 }
 0x625   :  { %1834 = vadd.xlane.f32.xlu0 %v1833_v36  ;;  %v1759_v60 = vpop.f32.mrf.mxu1  ;;  %v1839_v47 = vsel %vm852_vm2, %v3354_v21, 0.0 }
 0x626   :  { %v1760_v26 = vadd.f32 %v1759_v60, %v1630_v23  ;;  %v1880_v41 = vsel %vm852_vm2, %v1862_v44, 0.0  ;;  %v1861_v38 = vmul.f32 %v3363_v37, %v3363_v37  ;;  %v3382_v48 = vadd.f32 %v3335_v39, %v1765_v45  ;;  %v2004_v39 = vld [vmem:[%s3492_s10 + $0x18] sm:$0xff]  ;;  %v3442_v14 = vpop.permute.xlu1 %1975 }
 0x627   :  { %1872 = vadd.xlane.f32.xlu1 %v1871_v56  ;;  %v1836_v13 = vsel %vm852_vm2, %v3363_v37, 0.0 }
 0x628   :  { %v3374_v32 = vadd.f32 %v1809_v0, %v1760_v26  ;;  %v1877_v43 = vsel %vm852_vm2, %v1861_v38, 0.0  ;;  %v1845_v51 = vsel %vm852_vm2, %v3382_v48, 0.0  ;;  %v1864_v9 = vmul.f32 %v3382_v48, %v3382_v48  ;;  %v2003_v0 = vld [vmem:[%s3492_s10 + $0x10] sm:$0xff] }
 0x629   :  { %1866 = vadd.xlane.f32.xlu0 %v1865_v50 }
 0x62a   :  { %v1842_v7 = vsel %vm852_vm2, %v3374_v32, 0.0  ;;  %v1886_v52 = vsel %vm852_vm2, %v1864_v9, 0.0  ;;  %v1863_v22 = vmul.f32 %v3374_v32, %v3374_v32  ;;  %v3444_v20 = vpop.permute.xlu1 %1970 }
 0x62b   :  { %1881 = vadd.xlane.f32.xlu1 %v1880_v41 }
 0x62c   :  { %v1883_v61 = vsel %vm852_vm2, %v1863_v22, 0.0 }
 0x62d   :  { %1831 = vadd.xlane.f32.xlu0 %v1830_v4 }
 0x62f   :  { %1878 = vadd.xlane.f32.xlu1 %v1877_v43 }
 0x631   :  { %1840 = vadd.xlane.f32.xlu0 %v1839_v47 }
 0x633   :  { %1843 = vadd.xlane.f32.xlu1 %v1842_v7 }
 0x635   :  { %1837 = vadd.xlane.f32.xlu0 %v1836_v13 }
 0x639   :  { %1846 = vadd.xlane.f32.xlu0 %v1845_v51 }
 0x63d   :  { %1887 = vadd.xlane.f32.xlu0 %v1886_v52 }
 0x644   :  { %1965 = vperm.xlu1 %2608, %v1947_v53  }
 0x653   :  { %2031 = vperm.xlu0 %2607, %v2005_v54  }
 0x657   :  { %2026 = vperm.xlu0 %2607, %v2004_v39  }
 0x65b   :  { %2021 = vperm.xlu0 %2607, %v2003_v0  }
 0x65f   :  { %2016 = vperm.xlu0 %2607, %v2002_v55  }
 0x663   :  { %2075 = vperm.xlu0 %2607, %v2069_v57  }
 0x667   :  { %2085 = vperm.xlu0 %2607, %v2071_v59  }
 0x668   :  { %1884 = vadd.xlane.f32.xlu1 %v1883_v61 }
 0x679   :  { %1960 = vperm.xlu1 %2608, %v1946_v62  }
 0x67d   :  { %1955 = vperm.xlu1 %2608, %v1945_v63  }
 0x681   :  { %2011 = vperm.xlu1 %2608, %v2001_v28  }
 0x685   :  { %2080 = vperm.xlu1 %2608, %v2070_v2  }
 0x689   :  { %2090 = vperm.xlu1 %2608, %v2072_v3  }
 0x6a6   :  { %v1829_v40 = vpop.xlane.xlu0 %1828 }
 0x6a7   :  { %v1850_v10 = vmul.f32 0.03125, %v1829_v40 }
 0x6a8   :  { %v3446_v15 = vpop.xlane.xlu1 %1869 }
 0x6aa   :  { %v1826_v30 = vpop.xlane.xlu0 %1825 }
 0x6ab   :  { %v1849_v25 = vmul.f32 0.03125, %v1826_v30 }
 0x6ac   :  { %v1876_v46 = vpop.xlane.xlu1 %1875 }
 0x6ad   :  { %v1897_v19 = vmul.f32 %v1849_v25, %v1849_v25  ;;  %v1913_v4 = vsub.f32 %v3339_v1, %v1849_v25 }
 0x6ae   :  { %v1835_v17 = vpop.xlane.xlu0 %1834 }
 0x6af   :  { %v1852_v28 = vmul.f32 0.03125, %v1835_v17 }
 0x6b0   :  { %v1873_v31 = vpop.xlane.xlu1 %1872 }
 0x6b1   :  { %v1900_v18 = vmul.f32 %v1852_v28, %v1852_v28 }
 0x6b2   :  { %v1867_v27 = vpop.xlane.xlu0 %1866 }
 0x6b3   :  { %v1889_v29 = vmul.f32 0.03125, %v1867_v27  ;;  %v1898_v27 = vmul.f32 %v1850_v10, %v1850_v10 }
 0x6b4   :  { %v1882_v36 = vpop.xlane.xlu1 %1881 }
 0x6b5   :  { %v1905_v33 = vsub.f32 %v1889_v29, %v1897_v19  ;;  %v1894_v44 = vmul.f32 0.03125, %v1882_v36  ;;  %v1890_v19 = vmul.f32 0.03125, %v3446_v15  ;;  %v1891_v29 = vmul.f32 0.03125, %v1873_v31 }
 0x6b6   :  { %v1832_v34 = vpop.xlane.xlu0 %1831 }
 0x6b7   :  { %v1921_v35 = vadd.f32 1e-05, %v1905_v33  ;;  %v1851_v3 = vmul.f32 0.03125, %v1832_v34  ;;  %v1906_v34 = vsub.f32 %v1890_v19, %v1898_v27 }
 0x6b8   :  { %v1879_v61 = vpop.xlane.xlu1 %1878 }
 0x6b9   :  { %2673 = vrsqrt.f32 %v1921_v35  ;;  %v1899_v25 = vmul.f32 %v1851_v3, %v1851_v3 }
 0x6ba   :  { %v1841_v49 = vpop.xlane.xlu0 %1840 }
 0x6bb   :  { %v1854_v56 = vmul.f32 0.03125, %v1841_v49  ;;  %v1907_v36 = vsub.f32 %v1891_v29, %v1899_v25 }
 0x6bd   :  { %v1902_v23 = vmul.f32 %v1854_v56, %v1854_v56  ;;  %v1918_v52 = vsub.f32 %v3354_v21, %v1854_v56  ;;  %v1844_v21 = vpop.xlane.xlu1 %1843  ;;  %v1923_v40 = vadd.f32 1e-05, %v1907_v36 }
 0x6be   :  { %v1838_v60 = vpop.xlane.xlu0 %1837 }
 0x6bf   :  { %v1910_v50 = vsub.f32 %v1894_v44, %v1902_v23  ;;  %v1853_v63 = vmul.f32 0.03125, %v1838_v60 }
 0x6c1   :  { %v1926_v26 = vadd.f32 1e-05, %v1910_v50  ;;  %v1901_v2 = vmul.f32 %v1853_v63, %v1853_v63  ;;  %v1966_v30 = vpop.permute.xlu1 %1965  ;;  %v1917_v15 = vsub.f32 %v3363_v37, %v1853_v63  ;;  %v1914_v37 = vsub.f32 %v3337_v58, %v1850_v10 }
 0x6c2   :  { %v1847_v41 = vpop.xlane.xlu0 %1846 }
 0x6c3   :  { %2675 = vrsqrt.f32 %v1926_v26  ;;  %v1856_v38 = vmul.f32 0.03125, %v1847_v41 }
 0x6c5   :  { %v1904_v47 = vmul.f32 %v1856_v38, %v1856_v38  ;;  %v1920_v55 = vsub.f32 %v3382_v48, %v1856_v38  ;;  %v1892_v48 = vmul.f32 0.03125, %v1876_v46  ;;  %v1922_v46 = vadd.f32 1e-05, %v1906_v34 }
 0x6c6   :  { %v2674_v43 = vpop.eup %2673  ;;  %v1888_v45 = vpop.xlane.xlu0 %1887 }
 0x6c7   :  { %v1896_v7 = vmul.f32 0.03125, %v1888_v45  ;;  %v3449_v13 = vmul.f32 %v2674_v43, %v1913_v4  ;;  %v1916_v45 = vsub.f32 %v3345_v16, %v1852_v28 }
 0x6c9   :  { %v1912_v51 = vsub.f32 %v1896_v7, %v1904_v47 }
 0x6cb   :  { %v1928_v9 = vadd.f32 1e-05, %v1912_v51  ;;  %v1915_v51 = vsub.f32 %v3348_v24, %v1851_v3 }
 0x6cd   :  { %2677 = vrsqrt.f32 %v1928_v9 }
 0x6ce   :  { %v2032_v60 = vpop.permute.xlu0 %2031 }
 0x6d0   :  { %v2676_v53 = vpop.eup %2675 }
 0x6d1   :  { %v1942_v54 = vmul.f32 %v2676_v53, %v1918_v52 }
 0x6d2   :  { %v2027_v4 = vpop.permute.xlu0 %2026 }
 0x6d3   :  { %v1998_v39 = vmul.f32 %v1981_v8, %v1942_v54  ;;  %v1893_v8 = vmul.f32 0.03125, %v1879_v61 }
 0x6d5   :  { %v3452_v0 = vadd.f32 %v2037_v42, %v1998_v39  ;;  %v1909_v42 = vsub.f32 %v1893_v8, %v1901_v2 }
 0x6d7   :  { %v1925_v33 = vadd.f32 1e-05, %v1909_v42 }
 0x6d9   :  { %2679 = vrsqrt.f32 %v1925_v33 }
 0x6da   :  { %v2678_v57 = vpop.eup %2677 }
 0x6db   :  { %v1944_v1 = vmul.f32 %v2678_v57, %v1920_v55  ;;  %v2022_v55 = vpop.permute.xlu0 %2021 }
 0x6dd   :  { %v2000_v22 = vmul.f32 %v1991_v5, %v1944_v1  ;;  %v1855_v5 = vmul.f32 0.03125, %v1844_v21 }
 0x6df   :  { %v2056_v59 = vadd.f32 %v2047_v6, %v2000_v22  ;;  %v1908_v6 = vsub.f32 %v1892_v48, %v1900_v18  ;;  %v1903_v17 = vmul.f32 %v1855_v5, %v1855_v5  ;;  %v1919_v26 = vsub.f32 %v3374_v32, %v1855_v5  ;;  %v2068_v18 = vld [vmem:[%s3493_s11 + $0x18] sm:$0xff] }
 0x6e1   :  { %v2064_v62 = vmax.f32 %v2056_v59, 0.0  ;;  %v1924_v56 = vadd.f32 1e-05, %v1908_v6 }
 0x6e3   :  { %2563 = vmatprep.subr.mxu0 %v2064_v62  ;;  %2585 = vmatprep.subr.mxu1 %v2064_v62  ;;  %2681 = vrsqrt.f32 %v1924_v56 }
 0x6e4   :  { %2564 = vmatpush3.msra.mxu0 %v2064_v62  ;;  %2593 = vmatpush3.msra.mxu1 %v2064_v62 }
 0x6e6   :  { %v2680_v50 = vpop.eup %2679 }
 0x6e7   :  { %v1941_v41 = vmul.f32 %v2680_v50, %v1917_v15 }
 0x6e9   :  { %v1997_v9 = vmul.f32 %v3442_v14, %v1941_v41 }
 0x6eb   :  { %v2053_v1 = vadd.f32 %v2032_v60, %v1997_v9 }
 0x6ed   :  { %v2061_v58 = vmax.f32 %v2053_v1, 0.0 }
 0x6f0   :  { %v2682_v31 = vpop.eup %2681 }
 0x6f1   :  { %v1885_v35 = vpop.xlane.xlu1 %1884  ;;  %v1940_v52 = vmul.f32 %v2682_v31, %v1916_v45 }
 0x6f2   :  { %v1895_v49 = vmul.f32 0.03125, %v1885_v35 }
 0x6f3   :  { %v1996_v16 = vmul.f32 %v3444_v20, %v1940_v52 }
 0x6f4   :  { %v1911_v44 = vsub.f32 %v1895_v49, %v1903_v17 }
 0x6f5   :  { %v1961_v43 = vpop.permute.xlu1 %1960  ;;  %v2052_v24 = vadd.f32 %v2027_v4, %v1996_v16 }
 0x6f6   :  { %v1927_v23 = vadd.f32 1e-05, %v1911_v44 }
 0x6f7   :  { %v2060_v20 = vmax.f32 %v2052_v24, 0.0 }
 0x6f8   :  { %2683 = vrsqrt.f32 %v1927_v23 }
 0x6f9   :  { %2685 = vrsqrt.f32 %v1923_v40  ;;  %v1956_v57 = vpop.permute.xlu1 %1955 }
 0x6fa   :  { %2687 = vrsqrt.f32 %v1922_v46  ;;  %v1993_v21 = vmul.f32 %v1956_v57, %v3449_v13  ;;  %v2066_v13 = vld [vmem:[%s3493_s11 + $0x8] sm:$0xff]  ;;  %s2689_s11 = scalar_lea.vmem %s2201_s14, 512 }
 0x6fb   :  { %p2690_p0 = scmp.ne.s32.totalorder %s2201_s14, %s2689_s11  ;;  %p2695_p2 = scmp.lt.s32.totalorder %s2689_s11, %s2689_s11 }
 0x6fd   :  { %v2012_v63 = vpop.permute.xlu1 %2011  ;;  %p2696_p3 = por %p2695_p2, %p2694_p1 }
 0x6ff   :  { %p2697_p4 = pnand %p2696_p3, %p2690_p0 }
 0x701   :  { %v2081_v10 = vpop.permute.xlu1 %2080 }
 0x705   :  { %v2684_v38 = vpop.eup %2683  ;;  %v2091_v48 = vpop.permute.xlu1 %2090 }
 0x706   :  { %v1943_v47 = vmul.f32 %v2684_v38, %v1919_v26  ;;  %v2686_v7 = vpop.eup %2685 }
 0x707   :  { %v2688_v54 = vpop.eup %2687  ;;  %v1939_v39 = vmul.f32 %v2686_v7, %v1915_v51 }
 0x708   :  { %v1999_v53 = vmul.f32 %v3430_v11, %v1943_v47  ;;  %v1938_v22 = vmul.f32 %v2688_v54, %v1914_v37  ;;  %v2062_v11 = vmax.f32 %v3452_v0, 0.0  ;;  %v2049_v0 = vadd.f32 %v2012_v63, %v1993_v21 }
 0x709   :  { %v1995_v61 = vmul.f32 %v1966_v30, %v1939_v39 }
 0x70a   :  { %v2055_v32 = vadd.f32 %v3438_v12, %v1999_v53  ;;  %v1994_v62 = vmul.f32 %v1961_v43, %v1938_v22  ;;  %v2017_v12 = vpop.permute.xlu0 %2016  ;;  %v2057_v8 = vmax.f32 %v2049_v0, 0.0 }
 0x70b   :  { %v2051_v14 = vadd.f32 %v2022_v55, %v1995_v61 }
 0x70c   :  { %v2063_v59 = vmax.f32 %v2055_v32, 0.0  ;;  %v2050_v28 = vadd.f32 %v2017_v12, %v1994_v62 }
 0x70d   :  { %v2059_v2 = vmax.f32 %v2051_v14, 0.0 }
 0x70e   :  { %2565 = vmatprep.subr.mxu0 %v2063_v59  ;;  %2586 = vmatprep.subr.mxu1 %v2063_v59  ;;  %v2058_v3 = vmax.f32 %v2050_v28, 0.0  ;;  %v2076_v42 = vpop.permute.xlu0 %2075 }
 0x70f   :  { %2566 = vmatpush3.msra.mxu0 %v2063_v59  ;;  %2594 = vmatpush3.msra.mxu1 %v2063_v59 }
 0x710   :  { %2567 = vmatprep.subr.mxu0 %v2062_v11  ;;  %2587 = vmatprep.subr.mxu1 %v2062_v11 }
 0x711   :  { %2568 = vmatpush3.msra.mxu0 %v2062_v11  ;;  %2595 = vmatpush3.msra.mxu1 %v2062_v11 }
 0x712   :  { %2569 = vmatprep.subr.mxu0 %v2061_v58  ;;  %2588 = vmatprep.subr.mxu1 %v2061_v58  ;;  %v2086_v5 = vpop.permute.xlu0 %2085 }
 0x713   :  { %2570 = vmatpush3.msra.mxu0 %v2061_v58  ;;  %2596 = vmatpush3.msra.mxu1 %v2061_v58 }
 0x714   :  { %2571 = vmatprep.subr.mxu0 %v2060_v20  ;;  %2589 = vmatprep.subr.mxu1 %v2060_v20 }
 0x715   :  { %2572 = vmatpush3.msra.mxu0 %v2060_v20  ;;  %2597 = vmatpush3.msra.mxu1 %v2060_v20 }
 0x716   :  { %2573 = vmatprep.subr.mxu0 %v2059_v2  ;;  %2590 = vmatprep.subr.mxu1 %v2059_v2 }
 0x717   :  { %2574 = vmatpush3.msra.mxu0 %v2059_v2  ;;  %2598 = vmatpush3.msra.mxu1 %v2059_v2 }
 0x718   :  { %2575 = vmatprep.subr.mxu0 %v2058_v3  ;;  %2591 = vmatprep.subr.mxu1 %v2058_v3 }
 0x719   :  { %2576 = vmatpush3.msra.mxu0 %v2058_v3  ;;  %2599 = vmatpush3.msra.mxu1 %v2058_v3 }
 0x71a   :  { %2577 = vmatprep.subr.mxu0 %v2057_v8  ;;  %2592 = vmatprep.subr.mxu1 %v2057_v8 }
 0x71b   :  { %2578 = vmatpush3.msra.mxu0 %v2057_v8  ;;  %2600 = vmatpush3.msra.mxu1 %v2057_v8 }
 0x71c   :  { %2580 = vmatmul.mubr.msk.f32.vlgmr.msra.gmra.mxu0 %vm2093_vm4, %v2066_v13  ;;  %2583 = vmatmul.mubr.msk.f32.vlgmr.msra.gmra.mxu1 %vm2093_vm4, %v2068_v18 }
 0x7dc   :  { %v2581_v30 = vpop.f32.mrf.mxu0  ;;  %v2584_v25 = vpop.f32.mrf.mxu1 }
 0x7dd   :  { %v2178_v6 = vadd.f32 %v2581_v30, %v2081_v10  ;;  %v2188_v27 = vadd.f32 %v2584_v25, %v2091_v48 }
 0x7de   :  { %v2172_v19 = vpop.f32.mrf.mxu0  ;;  %v2182_v29 = vpop.f32.mrf.mxu1 }
 0x7df   :  { %2192 = vst.msk [vmem:[#allocation2 + $0x8] sm:$0xff] %vm852_vm2, %v2178_v6  ;;  %2194 = vst.msk [vmem:[#allocation2 + $0x18] sm:$0xff] %vm852_vm2, %v2188_v27  ;;  %v2173_v33 = vadd.f32 %v2172_v19, %v2076_v42  ;;  %v2183_v35 = vadd.f32 %v2182_v29, %v2086_v5 }
 0x7e1   :  { %2191 = vst.msk [vmem:[#allocation2] sm:$0xff] %vm852_vm2, %v2173_v33  ;;  %2193 = vst.msk [vmem:[#allocation2 + $0x10] sm:$0xff] %vm852_vm2, %v2183_v35 }
 0x7e2   :  { %2700 = shalt.err (!%p2697_p4)
}
 0x7e3   :  { %s2715_s15 = smov 128   ;;  %s2716_s1 = smov 8  }
 0x7e4   :  { %2206 = dma.vmem_to_hbm [thread:$0]  %s2201_s14, 512, %s3495_s13, [#allocation3], %s2715_s15, %s2715_s15, %s2716_s1  }
 0x7e5   :  { %2709 = dma.done.wait [#allocation3], 512  }
 0x7e6   :  { %2710 = vsyncadd [#allocation3], 4294966784 }
 0x7e7   :  { %2210 = vsyncpa [#allocation3], 1 }

</bundles_post_ra>
